<compile_context>
chip_gen: v5e
topology: v5e:2x2
jax: 0.10.0
libtpu: 0.0.40
codegen_flags: <defaults>
</compile_context>

<pallas_src>
import math

import jax
import jax.numpy as jnp
from jax.experimental import pallas as pl
from jax.experimental.pallas import tpu as pltpu


def _round_up(x, m):
    return (x + m - 1) // m * m


def _pick_tile_rows(H, W, C_in, Cp, target_tile_m, tile_rows):
    """Rows-per-tile TH such that TH*W is sublane-aligned and VMEM stays modest."""
    align = 8 // math.gcd(W, 8)            # TH multiple of this => (TH*W) % 8 == 0
    h_cap = _round_up(H, align)
    if tile_rows is not None:
        return min(_round_up(tile_rows, align), h_cap)
    th = max(align, (target_tile_m // max(W, 1)) // align * align)
    th = min(th, h_cap)

    def _ws(t):  # double-buffered slab + y tile (bf16)
        return 2 * ((t + 2) * (W + 2) * C_in * 2 + t * W * Cp * 2)

    while th > align and _ws(th) > (12 << 20):
        th -= align
    return th


def single_conv_forward_nhwc(x_nhwc, weight, bias, gamma, beta, eps=1e-5,
                             target_tile_m=2048, tile_rows=None):
    """Forward of PyTorch `single_conv` on NHWC activations: (N,H,W,Cin) -> (N,H,W,Cout).

    The Conv2d bias is folded away: train-mode BatchNorm subtracts the batch mean,
    which cancels any per-channel constant exactly.
    """
    del bias  # exactly cancelled by BN mean subtraction (train mode)

    N, H, W, C_in = x_nhwc.shape
    C_out = weight.shape[0]

    Cp = _round_up(C_out, 128)             # lane-dense channels (padded only in VMEM-bound ops)
    TH = _pick_tile_rows(H, W, C_in, Cp, target_tile_m, tile_rows)
    Hp = _round_up(H, TH)
    n_row_tiles = Hp // TH
    num_tiles = N * n_row_tiles
    TM = TH * W                            # matmul rows per tile (multiple of 8)
    Mp = num_tiles * TM                    # = N * Hp * W
    M = N * H * W                          # real pixel count (BN divisor)

    compute_dtype = jnp.bfloat16
    out_dtype = x_nhwc.dtype
    out_itemsize = jnp.dtype(out_dtype).itemsize

    # ---- wrapper layout plumbing (one fused XLA pass over x: cast + pad + halo-window) ----
    x_pad = jnp.pad(x_nhwc.astype(compute_dtype),
                    ((0, 0), (1, 1 + Hp - H), (1, 1), (0, 0)))       # (N, Hp+2, W+2, Cin)
    # overlapping haloed row-slabs: tile t covers padded rows [t*TH, t*TH + TH + 2)
    slabs = jnp.stack(
        [x_pad[:, t * TH:t * TH + TH + 2] for t in range(n_row_tiles)],
        axis=1).reshape(num_tiles, TH + 2, W + 2, C_in)

    # PyTorch weight (Cout, Cin, 3, 3) -> (kh*3+kw, Cin, Cp), bf16, zero-padded channels.
    w_taps = jnp.transpose(weight, (2, 3, 1, 0)).reshape(9, C_in, C_out)
    w_taps = jnp.pad(w_taps, ((0, 0), (0, 0), (0, Cp - C_out))).astype(compute_dtype)

    # ---- pass 1: in-VMEM im2col + conv matmul (MXU) + per-tile partial BN moments ----
    def conv_moments_kernel(slab_ref, w_ref, y_ref, mom_ref):
        acc = jnp.zeros((TM, Cp), jnp.float32)
        for kh in range(3):
            for kw in range(3):
                tap = slab_ref[kh:kh + TH, kw:kw + W, :].reshape(TM, C_in)
                acc = acc + jnp.dot(tap, w_ref[kh * 3 + kw],
                                    preferred_element_type=jnp.float32)
        if Hp != H:
            # rows that only exist due to H-alignment padding must not touch the moments
            t = pl.program_id(0) % n_row_tiles
            row = t * TH + jax.lax.broadcasted_iota(jnp.int32, (TM, 1), 0) // W
            acc = jnp.where(row < H, acc, 0.0)
        y_ref[...] = acc.astype(y_ref.dtype)                          # bf16 intermediate
        mom_ref[0:1, :] = jnp.sum(acc, axis=0, keepdims=True)         # from the f32 accumulator
        mom_ref[1:2, :] = jnp.sum(acc * acc, axis=0, keepdims=True)

    slab_bytes = (TH + 2) * (W + 2) * C_in * 2
    w_bytes = 9 * C_in * Cp * 2
    y_tile_bytes = TM * Cp * 2
    p1_need = 2 * (slab_bytes + w_bytes + y_tile_bytes + 2 * Cp * 4)  # double-buffered
    p1_vmem = int(min(max(2 * p1_need, 16 << 20), 40 << 20))          # <= 40 MiB (v7x: 64 MiB/TC)

    y_flat, moments = pl.pallas_call(
        conv_moments_kernel,
        grid=(num_tiles,),
        in_specs=[
            pl.BlockSpec((None, TH + 2, W + 2, C_in), lambda i: (i, 0, 0, 0)),
            # constant index_map: the (small) weight block is only DMA'd when its index
            # changes, i.e. once.
            pl.BlockSpec((9, C_in, Cp), lambda i: (0, 0, 0)),
        ],
        out_specs=(
            pl.BlockSpec((TM, Cp), lambda i: (i, 0)),
            pl.BlockSpec((None, 2, Cp), lambda i: (i, 0, 0)),
        ),
        out_shape=(
            jax.ShapeDtypeStruct((Mp, Cp), compute_dtype),            # y stored as bf16
            jax.ShapeDtypeStruct((num_tiles, 2, Cp), jnp.float32),
        ),
        compiler_params=pltpu.CompilerParams(
            dimension_semantics=("parallel",),                        # per-tile moments -> race-free
            vmem_limit_bytes=p1_vmem,
        ),
        cost_estimate=pl.CostEstimate(
            flops=2 * Mp * 9 * C_in * Cp,
            transcendentals=0,
            bytes_accessed=num_tiles * slab_bytes + w_bytes + Mp * Cp * 2
                           + num_tiles * 2 * Cp * 4,
        ),
    )(slabs, w_taps)

    # ---- tiny cross-tile moment reduction + BN coefficient folding (XLA, a few KB) ----
    sums = jnp.sum(moments, axis=0)                        # (2, Cp)
    mean = sums[0] / M
    var = jnp.maximum(sums[1] / M - mean * mean, 0.0)      # biased variance (train-mode BN)
    inv_std = jax.lax.rsqrt(var + eps)
    gamma_p = jnp.pad(gamma.astype(jnp.float32), (0, Cp - C_out))
    beta_p = jnp.pad(beta.astype(jnp.float32), (0, Cp - C_out))
    scale = gamma_p * inv_std
    shift = beta_p - mean * scale
    scale_shift = jnp.stack([scale, shift], axis=0)        # (2, Cp) f32, one operand

    # ---- pass 2: fused BN affine + ReLU over the bf16 intermediate ----
    def bn_relu_kernel(y_ref, ss_ref, out_ref):
        y = y_ref[...].astype(jnp.float32)
        out_ref[...] = jnp.maximum(y * ss_ref[0:1, :] + ss_ref[1:2, :],
                                   0.0).astype(out_ref.dtype)

    p2_need = 2 * (y_tile_bytes + TM * Cp * out_itemsize + 2 * Cp * 4)
    p2_vmem = int(min(max(2 * p2_need, 16 << 20), 40 << 20))

    out_flat = pl.pallas_call(
        bn_relu_kernel,
        grid=(num_tiles,),
        in_specs=[
            pl.BlockSpec((TM, Cp), lambda i: (i, 0)),
            pl.BlockSpec((2, Cp), lambda i: (0, 0)),
        ],
        out_specs=pl.BlockSpec((TM, Cp), lambda i: (i, 0)),
        out_shape=jax.ShapeDtypeStruct((Mp, Cp), out_dtype),
        compiler_params=pltpu.CompilerParams(
            dimension_semantics=("parallel",),
            vmem_limit_bytes=p2_vmem,
        ),
        cost_estimate=pl.CostEstimate(
            flops=2 * Mp * Cp,
            transcendentals=0,
            bytes_accessed=Mp * Cp * 2 + Mp * Cp * out_itemsize + 2 * Cp * 4,
        ),
    )(y_flat, scale_shift)

    return out_flat.reshape(N, Hp, W, Cp)[:, :H, :, :C_out]


def single_conv_forward(x_nchw, weight, bias, gamma, beta, eps=1e-5,
                        target_tile_m=2048, tile_rows=None):
    """PyTorch-layout wrapper: (N, C_in, H, W) -> (N, C_out, H, W).

    Prefer `single_conv_forward_nhwc` when the caller can keep NHWC activations:
    the two transposes here are extra full passes over the (mem-bound) tensor.
    """
    x_nhwc = jnp.transpose(x_nchw, (0, 2, 3, 1))
    out = single_conv_forward_nhwc(x_nhwc, weight, bias, gamma, beta, eps=eps,
                                   target_tile_m=target_tile_m, tile_rows=tile_rows)
    return jnp.transpose(out, (0, 3, 1, 2))


def _reference(x, weight, bias, gamma, beta, eps=1e-5):
    """Pure-JAX reference mirroring PyTorch semantics (train-mode BN)."""
    y = jax.lax.conv_general_dilated(
        x, weight, window_strides=(1, 1), padding=((1, 1), (1, 1)),
        dimension_numbers=("NCHW", "OIHW", "NCHW"),
        precision=jax.lax.Precision.HIGHEST)
    y = y + bias[None, :, None, None]
    mean = jnp.mean(y, axis=(0, 2, 3), keepdims=True)
    var = jnp.mean((y - mean) ** 2, axis=(0, 2, 3), keepdims=True)
    y = (y - mean) / jnp.sqrt(var + eps)
    y = y * gamma[None, :, None, None] + beta[None, :, None, None]
    return jnp.maximum(y, 0.0)


if __name__ == "__main__":
    N, C_in, C_out, H, W = 2, 4, 8, 16, 16

    key = jax.random.PRNGKey(0)
    k_x, k_w, k_b = jax.random.split(key, 3)

    x = jax.random.normal(k_x, (N, C_in, H, W), jnp.float32)
    weight = 0.1 * jax.random.normal(k_w, (C_out, C_in, 3, 3), jnp.float32)
    bias = 0.1 * jax.random.normal(k_b, (C_out,), jnp.float32)
    gamma = jnp.ones((C_out,), jnp.float32)   # BatchNorm2d default weight
    beta = jnp.zeros((C_out,), jnp.float32)   # BatchNorm2d default bias

    # tile_rows=8 -> 2 row tiles per image, 4 grid tiles total: exercises the in-kernel
    # halo slicing and the cross-tile moment reduction; an even tile count also keeps
    # v7x's two TensorCores balanced.
    out = single_conv_forward(x, weight, bias, gamma, beta, tile_rows=8)
    out = jax.block_until_ready(out)
    assert out.shape == (N, C_out, H, W)

    # The kernel feeds the MXU bf16 operands (f32 accumulation) and stores the conv
    # intermediate in bf16 (~2^-9 relative rounding before the BN affine), so compare
    # against a reference on the same bf16-rounded inputs with a tolerance that covers
    # the bf16 intermediate.
    x_r = x.astype(jnp.bfloat16).astype(jnp.float32)
    w_r = weight.astype(jnp.bfloat16).astype(jnp.float32)
    ref = jax.block_until_ready(_reference(x_r, w_r, bias, gamma, beta))
    assert jnp.allclose(out, ref, rtol=5e-3, atol=5e-3), \
        float(jnp.max(jnp.abs(out - ref)))

    print("KERNEL_OK")
</pallas_src>

<mosaic_0001>
module attributes {stable_mosaic.version = 11 : i64} {
  func.func @conv_moments_kernel(%arg0: i32, %arg1: memref<1x10x18x4xbf16, #tpu.memory_space<vmem>>, %arg2: memref<9x4x128xbf16, #tpu.memory_space<vmem>>, %arg3: memref<128x128xbf16, #tpu.memory_space<vmem>>, %arg4: memref<1x2x128xf32, #tpu.memory_space<vmem>>) attributes {dimension_semantics = [#tpu.dimension_semantics<parallel>], iteration_bounds = array<i64: 4>, scalar_prefetch = 0 : i64, scratch_operands = 0 : i64, tpu.core_type = #tpu.core_type<tc>, window_params = [{transform_indices = @transform_0, window_bounds = array<i64: 1, 10, 18, 4>}, {pipeline_mode = #tpu.pipeline_mode<synchronous>, transform_indices = @transform_1, window_bounds = array<i64: 9, 4, 128>}, {transform_indices = @transform_2, window_bounds = array<i64: 128, 128>}, {transform_indices = @transform_3, window_bounds = array<i64: 1, 2, 128>}]} {
    %cst = arith.constant 0.000000e+00 : f32
    %0 = vector.broadcast %cst : f32 to vector<128x128xf32>
    %c0 = arith.constant 0 : index
    %c0_0 = arith.constant 0 : index
    %c0_1 = arith.constant 0 : index
    %c0_2 = arith.constant 0 : index
    %1 = vector.load %arg1[%c0, %c0_0, %c0_1, %c0_2] : memref<1x10x18x4xbf16, #tpu.memory_space<vmem>>, vector<1x8x16x4xbf16>
    %2 = vector.shape_cast %1 : vector<1x8x16x4xbf16> to vector<8x16x4xbf16>
    %3 = vector.shape_cast %2 : vector<8x16x4xbf16> to vector<128x4xbf16>
    %c0_3 = arith.constant 0 : index
    %c0_4 = arith.constant 0 : index
    %c0_5 = arith.constant 0 : index
    %4 = vector.load %arg2[%c0_3, %c0_4, %c0_5] : memref<9x4x128xbf16, #tpu.memory_space<vmem>>, vector<1x4x128xbf16>
    %5 = vector.shape_cast %4 : vector<1x4x128xbf16> to vector<4x128xbf16>
    %cst_6 = arith.constant dense<0.000000e+00> : vector<128x128xf32>
    %6 = tpu.matmul %3, %5, %cst_6 {dimension_numbers = #tpu.dot_dimension_numbers<[1], [0], [0], [1], [0, 0, 1, 1], [], []>} : vector<128x4xbf16>, vector<4x128xbf16>, vector<128x128xf32> -> vector<128x128xf32>
    %7 = arith.addf %0, %6 : vector<128x128xf32>
    %c0_7 = arith.constant 0 : index
    %c0_8 = arith.constant 0 : index
    %c1 = arith.constant 1 : index
    %c0_9 = arith.constant 0 : index
    %8 = vector.load %arg1[%c0_7, %c0_8, %c1, %c0_9] : memref<1x10x18x4xbf16, #tpu.memory_space<vmem>>, vector<1x8x16x4xbf16>
    %9 = vector.shape_cast %8 : vector<1x8x16x4xbf16> to vector<8x16x4xbf16>
    %10 = vector.shape_cast %9 : vector<8x16x4xbf16> to vector<128x4xbf16>
    %c1_10 = arith.constant 1 : index
    %c0_11 = arith.constant 0 : index
    %c0_12 = arith.constant 0 : index
    %11 = vector.load %arg2[%c1_10, %c0_11, %c0_12] : memref<9x4x128xbf16, #tpu.memory_space<vmem>>, vector<1x4x128xbf16>
    %12 = vector.shape_cast %11 : vector<1x4x128xbf16> to vector<4x128xbf16>
    %cst_13 = arith.constant dense<0.000000e+00> : vector<128x128xf32>
    %13 = tpu.matmul %10, %12, %cst_13 {dimension_numbers = #tpu.dot_dimension_numbers<[1], [0], [0], [1], [0, 0, 1, 1], [], []>} : vector<128x4xbf16>, vector<4x128xbf16>, vector<128x128xf32> -> vector<128x128xf32>
    %14 = arith.addf %7, %13 : vector<128x128xf32>
    %c0_14 = arith.constant 0 : index
    %c0_15 = arith.constant 0 : index
    %c2 = arith.constant 2 : index
    %c0_16 = arith.constant 0 : index
    %15 = vector.load %arg1[%c0_14, %c0_15, %c2, %c0_16] : memref<1x10x18x4xbf16, #tpu.memory_space<vmem>>, vector<1x8x16x4xbf16>
    %16 = vector.shape_cast %15 : vector<1x8x16x4xbf16> to vector<8x16x4xbf16>
    %17 = vector.shape_cast %16 : vector<8x16x4xbf16> to vector<128x4xbf16>
    %c2_17 = arith.constant 2 : index
    %c0_18 = arith.constant 0 : index
    %c0_19 = arith.constant 0 : index
    %18 = vector.load %arg2[%c2_17, %c0_18, %c0_19] : memref<9x4x128xbf16, #tpu.memory_space<vmem>>, vector<1x4x128xbf16>
    %19 = vector.shape_cast %18 : vector<1x4x128xbf16> to vector<4x128xbf16>
    %cst_20 = arith.constant dense<0.000000e+00> : vector<128x128xf32>
    %20 = tpu.matmul %17, %19, %cst_20 {dimension_numbers = #tpu.dot_dimension_numbers<[1], [0], [0], [1], [0, 0, 1, 1], [], []>} : vector<128x4xbf16>, vector<4x128xbf16>, vector<128x128xf32> -> vector<128x128xf32>
    %21 = arith.addf %14, %20 : vector<128x128xf32>
    %c0_21 = arith.constant 0 : index
    %c1_22 = arith.constant 1 : index
    %c0_23 = arith.constant 0 : index
    %c0_24 = arith.constant 0 : index
    %22 = vector.load %arg1[%c0_21, %c1_22, %c0_23, %c0_24] : memref<1x10x18x4xbf16, #tpu.memory_space<vmem>>, vector<1x8x16x4xbf16>
    %23 = vector.shape_cast %22 : vector<1x8x16x4xbf16> to vector<8x16x4xbf16>
    %24 = vector.shape_cast %23 : vector<8x16x4xbf16> to vector<128x4xbf16>
    %c3 = arith.constant 3 : index
    %c0_25 = arith.constant 0 : index
    %c0_26 = arith.constant 0 : index
    %25 = vector.load %arg2[%c3, %c0_25, %c0_26] : memref<9x4x128xbf16, #tpu.memory_space<vmem>>, vector<1x4x128xbf16>
    %26 = vector.shape_cast %25 : vector<1x4x128xbf16> to vector<4x128xbf16>
    %cst_27 = arith.constant dense<0.000000e+00> : vector<128x128xf32>
    %27 = tpu.matmul %24, %26, %cst_27 {dimension_numbers = #tpu.dot_dimension_numbers<[1], [0], [0], [1], [0, 0, 1, 1], [], []>} : vector<128x4xbf16>, vector<4x128xbf16>, vector<128x128xf32> -> vector<128x128xf32>
    %28 = arith.addf %21, %27 : vector<128x128xf32>
    %c0_28 = arith.constant 0 : index
    %c1_29 = arith.constant 1 : index
    %c1_30 = arith.constant 1 : index
    %c0_31 = arith.constant 0 : index
    %29 = vector.load %arg1[%c0_28, %c1_29, %c1_30, %c0_31] : memref<1x10x18x4xbf16, #tpu.memory_space<vmem>>, vector<1x8x16x4xbf16>
    %30 = vector.shape_cast %29 : vector<1x8x16x4xbf16> to vector<8x16x4xbf16>
    %31 = vector.shape_cast %30 : vector<8x16x4xbf16> to vector<128x4xbf16>
    %c4 = arith.constant 4 : index
    %c0_32 = arith.constant 0 : index
    %c0_33 = arith.constant 0 : index
    %32 = vector.load %arg2[%c4, %c0_32, %c0_33] : memref<9x4x128xbf16, #tpu.memory_space<vmem>>, vector<1x4x128xbf16>
    %33 = vector.shape_cast %32 : vector<1x4x128xbf16> to vector<4x128xbf16>
    %cst_34 = arith.constant dense<0.000000e+00> : vector<128x128xf32>
    %34 = tpu.matmul %31, %33, %cst_34 {dimension_numbers = #tpu.dot_dimension_numbers<[1], [0], [0], [1], [0, 0, 1, 1], [], []>} : vector<128x4xbf16>, vector<4x128xbf16>, vector<128x128xf32> -> vector<128x128xf32>
    %35 = arith.addf %28, %34 : vector<128x128xf32>
    %c0_35 = arith.constant 0 : index
    %c1_36 = arith.constant 1 : index
    %c2_37 = arith.constant 2 : index
    %c0_38 = arith.constant 0 : index
    %36 = vector.load %arg1[%c0_35, %c1_36, %c2_37, %c0_38] : memref<1x10x18x4xbf16, #tpu.memory_space<vmem>>, vector<1x8x16x4xbf16>
    %37 = vector.shape_cast %36 : vector<1x8x16x4xbf16> to vector<8x16x4xbf16>
    %38 = vector.shape_cast %37 : vector<8x16x4xbf16> to vector<128x4xbf16>
    %c5 = arith.constant 5 : index
    %c0_39 = arith.constant 0 : index
    %c0_40 = arith.constant 0 : index
    %39 = vector.load %arg2[%c5, %c0_39, %c0_40] : memref<9x4x128xbf16, #tpu.memory_space<vmem>>, vector<1x4x128xbf16>
    %40 = vector.shape_cast %39 : vector<1x4x128xbf16> to vector<4x128xbf16>
    %cst_41 = arith.constant dense<0.000000e+00> : vector<128x128xf32>
    %41 = tpu.matmul %38, %40, %cst_41 {dimension_numbers = #tpu.dot_dimension_numbers<[1], [0], [0], [1], [0, 0, 1, 1], [], []>} : vector<128x4xbf16>, vector<4x128xbf16>, vector<128x128xf32> -> vector<128x128xf32>
    %42 = arith.addf %35, %41 : vector<128x128xf32>
    %c0_42 = arith.constant 0 : index
    %c2_43 = arith.constant 2 : index
    %c0_44 = arith.constant 0 : index
    %c0_45 = arith.constant 0 : index
    %43 = vector.load %arg1[%c0_42, %c2_43, %c0_44, %c0_45] : memref<1x10x18x4xbf16, #tpu.memory_space<vmem>>, vector<1x8x16x4xbf16>
    %44 = vector.shape_cast %43 : vector<1x8x16x4xbf16> to vector<8x16x4xbf16>
    %45 = vector.shape_cast %44 : vector<8x16x4xbf16> to vector<128x4xbf16>
    %c6 = arith.constant 6 : index
    %c0_46 = arith.constant 0 : index
    %c0_47 = arith.constant 0 : index
    %46 = vector.load %arg2[%c6, %c0_46, %c0_47] : memref<9x4x128xbf16, #tpu.memory_space<vmem>>, vector<1x4x128xbf16>
    %47 = vector.shape_cast %46 : vector<1x4x128xbf16> to vector<4x128xbf16>
    %cst_48 = arith.constant dense<0.000000e+00> : vector<128x128xf32>
    %48 = tpu.matmul %45, %47, %cst_48 {dimension_numbers = #tpu.dot_dimension_numbers<[1], [0], [0], [1], [0, 0, 1, 1], [], []>} : vector<128x4xbf16>, vector<4x128xbf16>, vector<128x128xf32> -> vector<128x128xf32>
    %49 = arith.addf %42, %48 : vector<128x128xf32>
    %c0_49 = arith.constant 0 : index
    %c2_50 = arith.constant 2 : index
    %c1_51 = arith.constant 1 : index
    %c0_52 = arith.constant 0 : index
    %50 = vector.load %arg1[%c0_49, %c2_50, %c1_51, %c0_52] : memref<1x10x18x4xbf16, #tpu.memory_space<vmem>>, vector<1x8x16x4xbf16>
    %51 = vector.shape_cast %50 : vector<1x8x16x4xbf16> to vector<8x16x4xbf16>
    %52 = vector.shape_cast %51 : vector<8x16x4xbf16> to vector<128x4xbf16>
    %c7 = arith.constant 7 : index
    %c0_53 = arith.constant 0 : index
    %c0_54 = arith.constant 0 : index
    %53 = vector.load %arg2[%c7, %c0_53, %c0_54] : memref<9x4x128xbf16, #tpu.memory_space<vmem>>, vector<1x4x128xbf16>
    %54 = vector.shape_cast %53 : vector<1x4x128xbf16> to vector<4x128xbf16>
    %cst_55 = arith.constant dense<0.000000e+00> : vector<128x128xf32>
    %55 = tpu.matmul %52, %54, %cst_55 {dimension_numbers = #tpu.dot_dimension_numbers<[1], [0], [0], [1], [0, 0, 1, 1], [], []>} : vector<128x4xbf16>, vector<4x128xbf16>, vector<128x128xf32> -> vector<128x128xf32>
    %56 = arith.addf %49, %55 : vector<128x128xf32>
    %c0_56 = arith.constant 0 : index
    %c2_57 = arith.constant 2 : index
    %c2_58 = arith.constant 2 : index
    %c0_59 = arith.constant 0 : index
    %57 = vector.load %arg1[%c0_56, %c2_57, %c2_58, %c0_59] : memref<1x10x18x4xbf16, #tpu.memory_space<vmem>>, vector<1x8x16x4xbf16>
    %58 = vector.shape_cast %57 : vector<1x8x16x4xbf16> to vector<8x16x4xbf16>
    %59 = vector.shape_cast %58 : vector<8x16x4xbf16> to vector<128x4xbf16>
    %c8 = arith.constant 8 : index
    %c0_60 = arith.constant 0 : index
    %c0_61 = arith.constant 0 : index
    %60 = vector.load %arg2[%c8, %c0_60, %c0_61] : memref<9x4x128xbf16, #tpu.memory_space<vmem>>, vector<1x4x128xbf16>
    %61 = vector.shape_cast %60 : vector<1x4x128xbf16> to vector<4x128xbf16>
    %cst_62 = arith.constant dense<0.000000e+00> : vector<128x128xf32>
    %62 = tpu.matmul %59, %61, %cst_62 {dimension_numbers = #tpu.dot_dimension_numbers<[1], [0], [0], [1], [0, 0, 1, 1], [], []>} : vector<128x4xbf16>, vector<4x128xbf16>, vector<128x128xf32> -> vector<128x128xf32>
    %63 = arith.addf %56, %62 : vector<128x128xf32>
    %64 = arith.truncf %63 : vector<128x128xf32> to vector<128x128xbf16>
    %c0_63 = arith.constant 0 : index
    %c0_64 = arith.constant 0 : index
    %65 = vector.load %arg3[%c0_63, %c0_64] : memref<128x128xbf16, #tpu.memory_space<vmem>>, vector<128x128xbf16>
    tpu.vector_store %arg3[%c0_63, %c0_64], %64 {strides = array<i32>} : memref<128x128xbf16, #tpu.memory_space<vmem>>, vector<128x128xbf16>,
    %cst_65 = arith.constant dense<0.000000e+00> : vector<128xf32>
    %66 = vector.multi_reduction <add>, %63, %cst_65 [0] : vector<128x128xf32> to vector<128xf32>
    %67 = vector.shape_cast %66 : vector<128xf32> to vector<1x128xf32>
    %c0_66 = arith.constant 0 : index
    %c0_67 = arith.constant 0 : index
    %c0_68 = arith.constant 0 : index
    %68 = vector.load %arg4[%c0_66, %c0_67, %c0_68] : memref<1x2x128xf32, #tpu.memory_space<vmem>>, vector<1x1x128xf32>
    %69 = vector.shape_cast %68 : vector<1x1x128xf32> to vector<1x128xf32>
    %70 = vector.shape_cast %67 : vector<1x128xf32> to vector<1x1x128xf32>
    tpu.vector_store %arg4[%c0_66, %c0_67, %c0_68], %70 {strides = array<i32>} : memref<1x2x128xf32, #tpu.memory_space<vmem>>, vector<1x1x128xf32>,
    %71 = arith.mulf %63, %63 : vector<128x128xf32>
    %cst_69 = arith.constant dense<0.000000e+00> : vector<128xf32>
    %72 = vector.multi_reduction <add>, %71, %cst_69 [0] : vector<128x128xf32> to vector<128xf32>
    %73 = vector.shape_cast %72 : vector<128xf32> to vector<1x128xf32>
    %c0_70 = arith.constant 0 : index
    %c1_71 = arith.constant 1 : index
    %c0_72 = arith.constant 0 : index
    %74 = vector.load %arg4[%c0_70, %c1_71, %c0_72] : memref<1x2x128xf32, #tpu.memory_space<vmem>>, vector<1x1x128xf32>
    %75 = vector.shape_cast %74 : vector<1x1x128xf32> to vector<1x128xf32>
    %76 = vector.shape_cast %73 : vector<1x128xf32> to vector<1x1x128xf32>
    tpu.vector_store %arg4[%c0_70, %c1_71, %c0_72], %76 {strides = array<i32>} : memref<1x2x128xf32, #tpu.memory_space<vmem>>, vector<1x1x128xf32>,
    return
  }
  func.func @transform_0(%arg0: i32) -> (i32, i32, i32, i32) {
    %c0_i32 = arith.constant 0 : i32
    %c0_i32_0 = arith.constant 0 : i32
    %c0_i32_1 = arith.constant 0 : i32
    %c0_i32_2 = arith.constant 0 : i32
    return %arg0, %c0_i32, %c0_i32_0, %c0_i32_1 : i32, i32, i32, i32
  }
  func.func @transform_1(%arg0: i32) -> (i32, i32, i32) {
    %c0_i32 = arith.constant 0 : i32
    %c0_i32_0 = arith.constant 0 : i32
    %c0_i32_1 = arith.constant 0 : i32
    %c0_i32_2 = arith.constant 0 : i32
    return %c0_i32, %c0_i32_0, %c0_i32_1 : i32, i32, i32
  }
  func.func @transform_2(%arg0: i32) -> (i32, i32) {
    %c0_i32 = arith.constant 0 : i32
    %c0_i32_0 = arith.constant 0 : i32
    return %arg0, %c0_i32 : i32, i32
  }
  func.func @transform_3(%arg0: i32) -> (i32, i32, i32) {
    %c0_i32 = arith.constant 0 : i32
    %c0_i32_0 = arith.constant 0 : i32
    %c0_i32_1 = arith.constant 0 : i32
    return %arg0, %c0_i32, %c0_i32_0 : i32, i32, i32
  }
}

</mosaic_0001>

<bundles_post_ra>
// kernel: tpu_custom_call.1
= control target key start
LH: loop header
LB: loop body
LE: loop exit
PB: predicated region body
PF: predicated region fallthrough
CT: control target
= control target key end

     0   :  { %9 = vsyncpa [#allocation3], 0  ;;  %s3828_s0 = inlined_call_operand.vmem [shape: bf16[4,10,18,4], index: 0, kind: input, shape index: {}]   ;;  %s3829_s1 = inlined_call_operand.vmem [shape: bf16[9,4,128], index: 1, kind: input, shape index: {}]   ;;  %s3830_s2 = inlined_call_operand.hbm [shape: bf16[512,128], index: 2, kind: output, shape index: {0}]   ;;  %s3831_s3 = inlined_call_operand.hbm [shape: f32[4,2,128], index: 3, kind: output, shape index: {1}]  }
   0x1   :  { %11 = vsyncpa [#allocation3 + $0x1], 0 }
   0x2   :  { %12 = vsyncpa [#allocation5], 0 }
   0x3   :  { %14 = vsyncpa [#allocation5 + $0x1], 0  ;;  %s2977_s12 = smov 0   ;;  %s2979_s13 = smov 0  }
   0x4   :  { %s2981_s14 = smov 0   ;;  %s2983_s15 = smov 0  }
   0x5 LB: > { %s2998_s16 = sadd.s32 4294967295, %s2953_s15   ;;  %s2427_s17 = sadd.s32 4294967294, %s2953_s15   ;;  %s2953_s15 = sphi %s2983_s15, %s3841_s15   ;;  %s2949_s14 = sphi %s2981_s14, %s3840_s14   ;;  %s2945_s13 = sphi %s2979_s13, %s3839_s13   ;;  %s2941_s12 = sphi %s2977_s12, %s3838_s12  }
   0x6   : > { %s3002_s18 = sadd.s32 1, %s2953_s15   ;;  %s74_s19 = sadd.s32 1, %s2949_s14 }
   0x7   : > { %s71_s20 = ssub.s32 %s2953_s15, %s3002_s18  ;;  %p84_p0 = scmp.ne.s32.totalorder %s2949_s14, %s2945_s13 }
   0x8   : > { %p72_p1 = scmp.eq.s32.totalorder %s71_s20, 0  ;;  %p85_p2 = scmp.eq.s32.totalorder %s2998_s16, 3 }
   0x9   : > { %p90_p3 = scmp.ne.s32.totalorder %s2945_s13, %s2941_s12  ;;  %p91_p4 = scmp.eq.s32.totalorder %s2427_s17, 3 }
   0xa   : > { %s3013_s21 = scalar_select %p72_p1, %s2949_s14, %s74_s19  }
   0xb   : > { %p3015_p5 = por %p85_p2, %p84_p0  ;;  %p3019_p6 = por %p91_p4, %p90_p3 }
   0xc   : > { %p2430_p7 = scmp.ge.s32.totalorder %s2953_s15, 1  ;;  %p146_p8 = scmp.lt.s32.totalorder %s2953_s15, 5 }
   0xe   : > { %p147_p9 = pnand %p2430_p7, %p146_p8 }
   0xf   : > { %p175_p10 = scmp.lt.s32.totalorder (!%p147_p9), %s2998_s16, 3  ;;  %s3752_s29 = sand.u32 (!%p147_p9), 1, %s2945_s13  }
  0x10   : > { %150 = sbr.rel (%p147_p9) target bundleno = 489 (0x1e9), region = 28  ;;  %s2431_s30 = sshll.u32 (!%p147_p9), %s3752_s29, 6 }
  0x11   : > { %s3756_s4 = scalar_lea.vmem (!%p147_p9), [#allocation2], %s2431_s30  ;;  %s2761_s5 = sshll.u32 (!%p147_p9), %s2998_s16, 6 }
  0x12   : > { %s2315_s9 = sshll.u32 (!%p147_p9), %s3756_s4, 4  ;;  %s2879_s25 = scalar_lea.hbm (!%p147_p9), %s3830_s2, 256  ;;  %s2316_s9 = int_to_ptr.vmem [resolvable:$true] %s2315_s9 }
  0x15   : > { %v2434_v0 = vld [vmem:[%s3829_s1 + $0x2] sm:$0x3]  ;;  %vm453_vm0 = vcmask 1041408   ;;  %v2491_v2 = vld [vmem:[%s3829_s1 + $0x4] sm:$0x3]  ;;  %s176_s28 = scalar_select %p175_p10, %s2998_s16, 3 }
  0x16   : > { %v455_v1 = vsel %vm453_vm0, %v2434_v0, 0  ;;  %v756_v3 = vsel %vm453_vm0, %v2491_v2, 0  ;;  %v2516_v4 = vld [vmem:[%s3829_s1 + $0x6] sm:$0x3]  ;;  %v198_v5 = vld [vmem:[%s3829_s1] sm:$0x3] }
  0x17   : > { %2809 = vmatpush.bf16.msra.mxu1 %v455_v1  ;;  %2810 = vmatpush.bf16.msra.mxu2 %v455_v1  ;;  %v2581_v6 = vld [vmem:[%s3829_s1 + $0x8] sm:$0x3]  ;;  %s2812_s8 = smul.u32 120, %s176_s28  ;;  %v907_v7 = vsel %vm453_vm0, %v2516_v4, 0  ;;  %v571_v8 = vsel %vm453_vm0, %v198_v5, 0  ;;  %vm428_vm3 = vcmask 31744  }
  0x18   : > { %2811 = vmatpush.bf16.msra.mxu3 %v455_v1  ;;  %464 = vmatpush.bf16.msra.mxu0 %v455_v1  ;;  %v1241_v9 = vsel %vm453_vm0, %v2581_v6, 0  ;;  %vm207_vm1 = vsmask.f32 3328  ;;  %vm208_vm2 = vsmask.f32 7440  ;;  %vm646_vm5 = vcmask 1042432  }
  0x19   : > { %s3050_s11 = scalar_lea.vmem %s3828_s0, %s2812_s8  ;;  %vm3078_vm4 = vmor %vm207_vm1, %vm208_vm2  ;;  %vm647_vm6 = vcmask 1046532   ;;  %s2314_s8 = scalar_lea.hbm %s3830_s2, %s2761_s5 }
  0x1a   : > { %v186_v10 = vld [vmem:[%s3050_s11 + $0x18] sm:$0xf]  ;;  %v3054_v11 = vld [vmem:[%s3050_s11 + $0x1c] sm:$0xf]  ;;  %v3057_v12 = vld [vmem:[%s3050_s11 + $0x20] sm:$0x1] }
  0x1b   : > { %765 = vmatpush.bf16.msrb.mxu2 %v756_v3  ;;  %580 = vmatpush.bf16.msrb.mxu1 %v571_v8  ;;  %v259_v13 = vshrl.u32 %v186_v10, 16  ;;  %v262_v14 = vshll.u32 %v186_v10, 16  ;;  %v268_v15 = vshll.u32 %v3054_v11, 16  ;;  %v272_v16 = vshrl.u32 %v3054_v11, 16  ;;  %v190_v17 = vld [vmem:[%s3050_s11 + $0x30] sm:$0xf]  ;;  %vm3186_vm7 = vmor %vm646_vm5, %vm647_vm6 }
  0x1c   : > { %916 = vmatpush.bf16.msrb.mxu3 %v907_v7  ;;  %1250 = vmatpush.bf16.msrb.mxu0 %v1241_v9  ;;  %v278_v18 = vshll.u32 %v3057_v12, 16  ;;  %v3064_v19 = vld [vmem:[%s3050_s11 + $0x34] sm:$0xf]  ;;  %v3067_v20 = vld [vmem:[%s3050_s11 + $0x38] sm:$0x1]  ;;  %v307_v21 = vshrl.u32 %v190_v17, 16 }
  0x1d   : > { %v261_v22 = vrot.slane %v259_v13, 4  ;;  %v264_v23 = vrot.slane %v262_v14, 5  ;;  %v270_v24 = vrot.slane %v268_v15, 5  ;;  %v274_v25 = vrot.slane %v272_v16, 4  ;;  %v194_v26 = vld [vmem:[%s3050_s11 + $0x48] sm:$0xf] }
  0x1e   : > { %v280_v27 = vrot.slane %v278_v18, 5  ;;  %v309_v28 = vrot.slane %v307_v21, 4  ;;  %v310_v29 = vshll.u32 %v190_v17, 16  ;;  %v316_v30 = vshll.u32 %v3064_v19, 16  ;;  %v3074_v35 = vld [vmem:[%s3050_s11 + $0x4c] sm:$0xf] }
  0x1f   : > { %v265_v31 = vor.u32 %v264_v23, %v261_v22  ;;  %v275_v32 = vor.u32 %v274_v25, %v270_v24  ;;  %v320_v33 = vshrl.u32 %v3064_v19, 16  ;;  %v326_v34 = vshll.u32 %v3067_v20, 16  ;;  %v3083_v46 = vld [vmem:[%s3050_s11 + $0x50] sm:$0x1]  ;;  %v182_v54 = vld [vmem:[%s3050_s11] sm:$0xf] }
  0x20   : > { %v312_v37 = vrot.slane %v310_v29, 5  ;;  %v318_v38 = vrot.slane %v316_v30, 5  ;;  %v355_v39 = vshrl.u32 %v194_v26, 16  ;;  %v358_v40 = vshll.u32 %v194_v26, 16  ;;  %v3096_v2 = vld [vmem:[%s3050_s11 + $0x4] sm:$0xf] }
  0x21   : > { %v266_v41 = vrot.slane %v265_v31, 4  ;;  %v276_v42 = vrot.slane %v275_v32, 4  ;;  %v322_v43 = vrot.slane %v320_v33, 4  ;;  %v328_v44 = vrot.slane %v326_v34, 5  ;;  %v3101_v8 = vld [vmem:[%s3050_s11 + $0x8] sm:$0x1] }
  0x22   : > { %v313_v45 = vor.u32 %v312_v37, %v309_v28  ;;  %v357_v47 = vrot.slane %v355_v39, 4  ;;  %v360_v48 = vrot.slane %v358_v40, 5  ;;  %v364_v49 = vshll.u32 %v3074_v35, 16  ;;  %v188_v15 = vld [vmem:[%s3050_s11 + $0x24] sm:$0xf]  ;;  %s2317_s10 = sshll.u32 %s2314_s8, 4  ;;  %s2318_s10 = int_to_ptr.hbm [resolvable:$true] %s2317_s10 }
  0x23   : > { %v271_v50 = vsel %vm3078_vm4, %v266_v41, %v270_v24  ;;  %v281_v51 = vsel %vm3078_vm4, %v276_v42, %v280_v27  ;;  %v323_v52 = vor.u32 %v322_v43, %v318_v38  ;;  %v368_v53 = vshrl.u32 %v3074_v35, 16  ;;  %v3112_v26 = vld [vmem:[%s3050_s11 + $0x28] sm:$0xf]  ;;  %v3117_v30 = vld [vmem:[%s3050_s11 + $0x2c] sm:$0x1]  ;;  %s2873_s17 = sshra.s32 %s2318_s10, 4  ;;  %s2874_s17 = int_to_ptr.hbm [resolvable:$true] %s2873_s17 }
  0x24   : > { %v408_v55 = vunpack.c.l.b16 %v271_v50  ;;  %v409_v56 = vunpack.c.l.b16 %v281_v51  ;;  %v314_v57 = vrot.slane %v313_v45, 4  ;;  %v361_v58 = vor.u32 %v360_v48, %v357_v47  ;;  %v3125_v51 = vld [vmem:[%s3050_s11 + $0x40] sm:$0xf]  ;;  %s2875_s19 = scalar_lea.hbm %s2874_s17, 64  ;;  %p2880_p0 = scmp.lt.s32.totalorder %s2874_s17, %s3830_s2 }
  0x25   : > { %v324_v59 = vrot.slane %v323_v52, 4  ;;  %v366_v60 = vrot.slane %v364_v49, 5  ;;  %v370_v61 = vrot.slane %v368_v53, 4  ;;  %v374_v62 = vshll.u32 %v3083_v46, 16  ;;  %p2876_p11 = scmp.ne.s32.totalorder %s2874_s17, %s2875_s19  ;;  %p2881_p1 = scmp.lt.s32.totalorder %s2879_s25, %s2875_s19 }
  0x26   : > { %v422_v63 = vpack.c.b16 %v409_v56, %v408_v55  ;;  %v319_v0 = vsel %vm3078_vm4, %v314_v57, %v318_v38  ;;  %v362_v1 = vrot.slane %v361_v58, 4  ;;  %v211_v3 = vshrl.u32 %v182_v54, 16  ;;  %v192_v38 = vld [vmem:[%s3050_s11 + $0x3c] sm:$0xf]  ;;  %v3131_v56 = vld [vmem:[%s3050_s11 + $0x44] sm:$0x1] }
  0x27   : > { %v329_v4 = vsel %vm3078_vm4, %v324_v59, %v328_v44  ;;  %v412_v5 = vunpack.c.l.b16 %v319_v0  ;;  %v371_v6 = vor.u32 %v370_v61, %v366_v60  ;;  %v376_v7 = vrot.slane %v374_v62, 5  ;;  %v196_v58 = vld [vmem:[%s3050_s11 + $0x54] sm:$0xf]  ;;  %p2877_p12 = pnand %p2876_p11, %p3015_p5  ;;  %p2882_p2 = por %p2881_p1, %p2880_p0 }
  0x28   : > { %2437 = vmatmul.msk.bf16.vlgmr.msra.gmra.mxu1 %vm428_vm3, %v422_v63  ;;  %v413_v9 = vunpack.c.l.b16 %v329_v4  ;;  %v367_v10 = vsel %vm3078_vm4, %v362_v1, %v366_v60  ;;  %v213_v13 = vrot.slane %v211_v3, 4  ;;  %v214_v14 = vshll.u32 %v182_v54, 16 }
  0x29   : > { %v372_v16 = vrot.slane %v371_v6, 4  ;;  %v416_v17 = vunpack.c.l.b16 %v367_v10  ;;  %v220_v18 = vshll.u32 %v3096_v2, 16  ;;  %v224_v21 = vshrl.u32 %v3096_v2, 16  ;;  %p2878_p13 = pneg %p2877_p12 }
  0x2a   : > { %v424_v22 = vpack.c.b16 %v413_v9, %v412_v5  ;;  %v216_v23 = vrot.slane %v214_v14, 5  ;;  %v230_v24 = vshll.u32 %v3101_v8, 16  ;;  %v654_v25 = vrot.slane %v3101_v8, 5 }
  0x2b   : > { %v377_v27 = vsel %vm3078_vm4, %v372_v16, %v376_v7  ;;  %v222_v28 = vrot.slane %v220_v18, 5  ;;  %v226_v29 = vrot.slane %v224_v21, 4  ;;  %v283_v31 = vshrl.u32 %v188_v15, 16  ;;  %v3145_v16 = vld [vmem:[%s3050_s11 + $0x5c] sm:$0x1]  ;;  %p2883_p3 = pnand %p2882_p2, %p2878_p13 }
  0x2c   : > { %2439 = vmatmul.msk.bf16.vlgmr.msra.gmra.mxu2 %vm428_vm3, %v424_v22  ;;  %v417_v32 = vunpack.c.l.b16 %v377_v27  ;;  %v217_v33 = vor.u32 %v216_v23, %v213_v13  ;;  %v232_v34 = vrot.slane %v230_v24, 5  ;;  %v286_v37 = vshll.u32 %v188_v15, 16  ;;  %v3142_v15 = vld [vmem:[%s3050_s11 + $0x58] sm:$0xf]  ;;  %v184_v23 = vld [vmem:[%s3050_s11 + $0xc] sm:$0xf] }
  0x2d   : > { %v227_v39 = vor.u32 %v226_v29, %v222_v28  ;;  %v285_v40 = vrot.slane %v283_v31, 4  ;;  %v292_v41 = vshll.u32 %v3112_v26, 16  ;;  %v296_v42 = vshrl.u32 %v3112_v26, 16 }
  0x2e   : > { %v426_v43 = vpack.c.b16 %v417_v32, %v416_v17  ;;  %v218_v44 = vrot.slane %v217_v33, 4  ;;  %v288_v45 = vrot.slane %v286_v37, 5  ;;  %v302_v47 = vshll.u32 %v3117_v30, 16 }
  0x2f   : > { %v228_v48 = vrot.slane %v227_v39, 4  ;;  %v294_v49 = vrot.slane %v292_v41, 5  ;;  %v298_v50 = vrot.slane %v296_v42, 4  ;;  %v331_v52 = vshrl.u32 %v192_v38, 16 }
  0x30   : > { %2441 = vmatmul.msk.bf16.vlgmr.msra.gmra.mxu3 %vm428_vm3, %v426_v43  ;;  %v223_v53 = vsel %vm3078_vm4, %v218_v44, %v222_v28  ;;  %v289_v54 = vor.u32 %v288_v45, %v285_v40  ;;  %v304_v55 = vrot.slane %v302_v47, 5  ;;  %v334_v57 = vshll.u32 %v192_v38, 16  ;;  %v3157_v40 = vld [vmem:[%s3050_s11 + $0x10] sm:$0xf]  ;;  %v3160_v47 = vld [vmem:[%s3050_s11 + $0x14] sm:$0x1] }
  0x31   : > { %v233_v59 = vsel %vm3078_vm4, %v228_v48, %v232_v34  ;;  %v404_v60 = vunpack.c.l.b16 %v223_v53  ;;  %v299_v61 = vor.u32 %v298_v50, %v294_v49  ;;  %v333_v62 = vrot.slane %v331_v52, 4 }
  0x32   : > { %v405_v63 = vunpack.c.l.b16 %v233_v59  ;;  %v290_v0 = vrot.slane %v289_v54, 4  ;;  %v336_v1 = vrot.slane %v334_v57, 5  ;;  %v340_v3 = vshll.u32 %v3125_v51, 16 }
  0x33   : > { %v300_v4 = vrot.slane %v299_v61, 4  ;;  %v344_v5 = vshrl.u32 %v3125_v51, 16  ;;  %v350_v6 = vshll.u32 %v3131_v56, 16  ;;  %v379_v7 = vshrl.u32 %v196_v58, 16 }
  0x34   : > { %v420_v9 = vpack.c.b16 %v405_v63, %v404_v60  ;;  %v295_v10 = vsel %vm3078_vm4, %v290_v0, %v294_v49  ;;  %v337_v13 = vor.u32 %v336_v1, %v333_v62  ;;  %v342_v14 = vrot.slane %v340_v3, 5  ;;  %v622_v1 = vld [vmem:[%s3050_s11] sm:$0xe] }
  0x35   : > { %v305_v17 = vsel %vm3078_vm4, %v300_v4, %v304_v55  ;;  %v410_v18 = vunpack.c.l.b16 %v295_v10  ;;  %v346_v21 = vrot.slane %v344_v5, 4  ;;  %v352_v22 = vrot.slane %v350_v6, 5 }
  0x36   : > { %2435 = vmatmul.msk.bf16.vlgmr.msra.gmra.mxu0 %vm428_vm3, %v420_v9  ;;  %v411_v24 = vunpack.c.l.b16 %v305_v17  ;;  %v338_v27 = vrot.slane %v337_v13, 4  ;;  %v381_v28 = vrot.slane %v379_v7, 4  ;;  %v382_v29 = vshll.u32 %v196_v58, 16  ;;  %v2631_v7 = vld [vmem:[%s3829_s1 + $0xc] sm:$0x3] }
  0x37   : > { %v347_v31 = vor.u32 %v346_v21, %v342_v14  ;;  %v388_v32 = vshll.u32 %v3142_v15, 16  ;;  %v392_v33 = vshrl.u32 %v3142_v15, 16  ;;  %v398_v34 = vshll.u32 %v3145_v16, 16  ;;  %v2557_v9 = vld [vmem:[%s3050_s11 + $0xc] sm:$0xf] }
  0x38   : > { %v423_v37 = vpack.c.b16 %v411_v24, %v410_v18  ;;  %v343_v38 = vsel %vm3078_vm4, %v338_v27, %v342_v14  ;;  %v384_v39 = vrot.slane %v382_v29, 5  ;;  %v235_v41 = vshrl.u32 %v184_v23, 16  ;;  %v3181_v27 = vld [vmem:[%s3050_s11 + $0x10] sm:$0xf] }
  0x39   : > { %v348_v42 = vrot.slane %v347_v31, 4  ;;  %v414_v43 = vunpack.c.l.b16 %v343_v38  ;;  %v390_v44 = vrot.slane %v388_v32, 5  ;;  %v394_v45 = vrot.slane %v392_v33, 4 }
  0x3a   : > { %2438 = vmatmul.msk.bf16.gmra.mxu1 %vm428_vm3, %v423_v37  ;;  %v385_v48 = vor.u32 %v384_v39, %v381_v28  ;;  %v400_v49 = vrot.slane %v398_v34, 5  ;;  %v237_v50 = vrot.slane %v235_v41, 4  ;;  %v238_v52 = vshll.u32 %v184_v23, 16  ;;  %v3191_v37 = vld [vmem:[%s3050_s11 + $0x14] sm:$0x1] }
  0x3b   : > { %v353_v53 = vsel %vm3078_vm4, %v348_v42, %v352_v22  ;;  %v395_v54 = vor.u32 %v394_v45, %v390_v44  ;;  %v244_v55 = vshll.u32 %v3157_v40, 16  ;;  %v248_v57 = vshrl.u32 %v3157_v40, 16  ;;  %v2696_v41 = vld [vmem:[%s3829_s1 + $0xe] sm:$0x3]  ;;  %v2606_v45 = vld [vmem:[%s3829_s1 + $0xa] sm:$0x3] }
  0x3c   : > { %v415_v58 = vunpack.c.l.b16 %v353_v53  ;;  %v386_v59 = vrot.slane %v385_v48, 4  ;;  %v240_v60 = vrot.slane %v238_v52, 5  ;;  %v254_v61 = vshll.u32 %v3160_v47, 16  ;;  %v2721_v53 = vld [vmem:[%s3829_s1 + $0x10] sm:$0x3] }
  0x3d   : > { %v396_v62 = vrot.slane %v395_v54, 4  ;;  %v246_v63 = vrot.slane %v244_v55, 5  ;;  %v250_v0 = vrot.slane %v248_v57, 4  ;;  %v2483_v21 = vrot.slane %v622_v1, 9  ;;  %v2737_v55 = vld [vmem:[%s3050_s11] sm:$0xff] }
  0x3e   : > { %v425_v3 = vpack.c.b16 %v415_v58, %v414_v43  ;;  %v391_v4 = vsel %vm3078_vm4, %v386_v59, %v390_v44  ;;  %v241_v5 = vor.u32 %v240_v60, %v237_v50  ;;  %v256_v6 = vrot.slane %v254_v61, 5 }
  0x3f   : > { %v401_v10 = vsel %vm3078_vm4, %v396_v62, %v400_v49  ;;  %v418_v13 = vunpack.c.l.b16 %v391_v4  ;;  %v251_v14 = vor.u32 %v250_v0, %v246_v63  ;;  %v651_v22 = vrot.slane %v3096_v2, 5  ;;  %v3222_v4 = vld [vmem:[%s3050_s11 + $0x1c] sm:$0xf] }
  0x40   : > { %2440 = vmatmul.msk.bf16.gmra.mxu2 %vm428_vm3, %v425_v3  ;;  %v419_v17 = vunpack.c.l.b16 %v401_v10  ;;  %v242_v18 = vrot.slane %v241_v5, 4  ;;  %v1598_v24 = vsel %vm453_vm0, %v2631_v7, 0  ;;  %v999_v28 = vshrl.u32 %v2557_v9, 16  ;;  %v2560_v3 = vld [vmem:[%s3050_s11 + $0x18] sm:$0xf] }
  0x41   : > { %v252_v23 = vrot.slane %v251_v14, 4  ;;  %v1002_v29 = vshll.u32 %v2557_v9, 16  ;;  %v653_v34 = vrot.slane %v651_v22, 4  ;;  %1607 = vmatpush.bf16.msra.mxu2 %v1598_v24  ;;  %v1008_v44 = vshll.u32 %v3181_v27, 16  ;;  %v624_v5 = vld [vmem:[%s3050_s11 + $0x18] sm:$0xe] }
  0x42   : > { %v427_v31 = vpack.c.b16 %v419_v17, %v418_v13  ;;  %v247_v32 = vsel %vm3078_vm4, %v242_v18, %v246_v63  ;;  %v1001_v39 = vrot.slane %v999_v28, 4  ;;  %v652_v48 = vsel %vm3186_vm7, %v2483_v21, %v651_v22  ;;  %v623_v7 = vld [vmem:[%s3050_s11 + $0xc] sm:$0xe] }
  0x43   : > { %v257_v2 = vsel %vm3078_vm4, %v252_v23, %v256_v6  ;;  %v406_v38 = vunpack.c.l.b16 %v247_v32  ;;  %v1004_v43 = vrot.slane %v1002_v29, 5  ;;  %v655_v49 = vsel %vm3186_vm7, %v653_v34, %v654_v25  ;;  %v2745_v34 = vld [vmem:[%s3050_s11 + $0xc] sm:$0xff] }
  0x44   : > { %2442 = vmatmul.msk.bf16.gmra.mxu3 %vm428_vm3, %v427_v31  ;;  %v407_v42 = vunpack.c.l.b16 %v257_v2  ;;  %v1012_v50 = vshrl.u32 %v3181_v27, 16  ;;  %v1018_v52 = vshll.u32 %v3191_v37, 16  ;;  %v1010_v58 = vrot.slane %v1008_v44, 5 }
  0x45   : > { %v1005_v57 = vor.u32 %v1004_v43, %v1001_v39  ;;  %v1932_v59 = vsel %vm453_vm0, %v2696_v41, 0  ;;  %v1447_v25 = vsel %vm453_vm0, %v2606_v45, 0  ;;  %v707_v60 = vunpack.c.l.b16 %v652_v48 }
  0x46   : > { %v421_v54 = vpack.c.b16 %v407_v42, %v406_v38  ;;  %v1014_v8 = vrot.slane %v1012_v50, 4  ;;  %1941 = vmatpush.bf16.msra.mxu3 %v1932_v59  ;;  %v708_v61 = vunpack.c.l.b16 %v655_v49  ;;  %1456 = vmatpush.bf16.msra.mxu1 %v1447_v25  ;;  %v2138_v63 = vsel %vm453_vm0, %v2721_v53, 0 }
  0x47   : > { %v1006_v62 = vrot.slane %v1005_v57, 4  ;;  %v1020_v1 = vrot.slane %v1018_v52, 5  ;;  %2147 = vmatpush.bf16.msra.mxu0 %v2138_v63  ;;  %v658_v9 = vrot.slane %v3157_v40, 5  ;;  %v1023_v14 = vshrl.u32 %v2560_v3, 16  ;;  %v625_v63 = vld [vmem:[%s3050_s11 + $0x24] sm:$0xe] }
  0x48   : > { %2436 = vmatmul.msk.bf16.gmra.mxu0 %vm428_vm3, %v421_v54  ;;  %v1015_v0 = vor.u32 %v1014_v8, %v1010_v58  ;;  %v723_v10 = vpack.c.b16 %v708_v61, %v707_v60  ;;  %v1026_v17 = vshll.u32 %v2560_v3, 16  ;;  %v1032_v21 = vshll.u32 %v3222_v4, 16  ;;  %v2563_v61 = vld [vmem:[%s3050_s11 + $0x24] sm:$0xf] }
  0x49   : > { %v1011_v13 = vsel %vm3078_vm4, %v1006_v62, %v1010_v58  ;;  %v1036_v22 = vshrl.u32 %v3222_v4, 16  ;;  %v2485_v23 = vrot.slane %v624_v5, 9  ;;  %v2484_v24 = vrot.slane %v623_v7, 9  ;;  %v3256_v62 = vld [vmem:[%s3050_s11 + $0x28] sm:$0xf] }
  0x4a   : > { %2475 = vmatmul.msk.bf16.vlgmr.msrb.gmra.mxu1 %vm428_vm3, %v2737_v55  ;;  %v1016_v6 = vrot.slane %v1015_v0, 4  ;;  %v665_v28 = vrot.slane %v3054_v11, 5  ;;  %v1192_v40 = vunpack.c.l.b16 %v1011_v13  ;;  %v660_v29 = vrot.slane %v658_v9, 4  ;;  %v3241_v11 = vld [vmem:[%s3050_s11 + $0x20] sm:$0x1]  ;;  %v2738_v55 = vld [vmem:[%s3050_s11 + $0xc] sm:$0xff] }
  0x4b   : > { %v661_v31 = vrot.slane %v3160_v47, 5  ;;  %v668_v32 = vrot.slane %v3057_v12, 5  ;;  %v1025_v38 = vrot.slane %v1023_v14, 4  ;;  %v1028_v39 = vrot.slane %v1026_v17, 5 }
  0x4c   : > { %v1021_v18 = vsel %vm3078_vm4, %v1016_v6, %v1020_v1  ;;  %v666_v41 = vsel %vm3186_vm7, %v2485_v23, %v665_v28  ;;  %v1034_v42 = vrot.slane %v1032_v21, 5  ;;  %v1038_v43 = vrot.slane %v1036_v22, 4  ;;  %v2746_v22 = vld [vmem:[%s3050_s11 + $0x18] sm:$0xff] }
  0x4d   : > { %v1193_v2 = vunpack.c.l.b16 %v1021_v18  ;;  %v667_v44 = vrot.slane %v665_v28, 4  ;;  %v711_v45 = vunpack.c.l.b16 %v666_v41  ;;  %v659_v47 = vsel %vm3186_vm7, %v2484_v24, %v658_v9 }
  0x4e   : > { %v662_v49 = vsel %vm3186_vm7, %v660_v29, %v661_v31  ;;  %v1029_v50 = vor.u32 %v1028_v39, %v1025_v38  ;;  %v1039_v53 = vor.u32 %v1038_v43, %v1034_v42  ;;  %v1042_v54 = vshll.u32 %v3241_v11, 16  ;;  %v2566_v43 = vld [vmem:[%s3050_s11 + $0x30] sm:$0xf] }
  0x4f   : > { %v669_v12 = vsel %vm3186_vm7, %v667_v44, %v668_v32  ;;  %v1208_v48 = vpack.c.b16 %v1193_v2, %v1192_v40  ;;  %v709_v58 = vunpack.c.l.b16 %v659_v47  ;;  %v710_v59 = vunpack.c.l.b16 %v662_v49  ;;  %v3282_v44 = vld [vmem:[%s3050_s11 + $0x34] sm:$0xf] }
  0x50   : > { %2492 = vmatmul.msk.bf16.vlgmr.msrb.gmra.mxu2 %vm428_vm3, %v723_v10  ;;  %v712_v52 = vunpack.c.l.b16 %v669_v12  ;;  %v1030_v8 = vrot.slane %v1029_v50, 4  ;;  %v1040_v25 = vrot.slane %v1039_v53, 4  ;;  %v1044_v60 = vrot.slane %v1042_v54, 5 }
  0x51   : > { %v672_v0 = vrot.slane %v3112_v26, 5  ;;  %v675_v1 = vrot.slane %v3117_v30, 5  ;;  %v724_v3 = vpack.c.b16 %v710_v59, %v709_v58  ;;  %v2486_v5 = vrot.slane %v625_v63, 9  ;;  %v3294_v63 = vld [vmem:[%s3050_s11 + $0x38] sm:$0x1] }
  0x52   : > { %v725_v57 = vpack.c.b16 %v712_v52, %v711_v45  ;;  %v1035_v6 = vsel %vm3078_vm4, %v1030_v8, %v1034_v42  ;;  %v1047_v7 = vshrl.u32 %v2563_v61, 16  ;;  %v1050_v9 = vshll.u32 %v2563_v61, 16  ;;  %v2739_v42 = vld [vmem:[%s3050_s11 + $0x18] sm:$0xff] }
  0x53   : > { %v674_v10 = vrot.slane %v672_v0, 4  ;;  %v1045_v13 = vsel %vm3078_vm4, %v1040_v25, %v1044_v60  ;;  %v1056_v14 = vshll.u32 %v3256_v62, 16  ;;  %v1060_v17 = vshrl.u32 %v3256_v62, 16  ;;  %v2747_v25 = vld [vmem:[%s3050_s11 + $0x24] sm:$0xff] }
  0x54   : > { %2549 = vmatmul.msk.bf16.vlgmr.msrb.gmra.mxu3 %vm428_vm3, %v2745_v34  ;;  %v673_v26 = vsel %vm3186_vm7, %v2486_v5, %v672_v0  ;;  %v1194_v23 = vunpack.c.l.b16 %v1035_v6  ;;  %v1195_v24 = vunpack.c.l.b16 %v1045_v13  ;;  %v1049_v28 = vrot.slane %v1047_v7, 4  ;;  %v3274_v34 = vld [vmem:[%s3050_s11 + $0x2c] sm:$0x1]  ;;  %v2740_v6 = vld [vmem:[%s3050_s11 + $0x24] sm:$0xff]  ;;  %v3302_v13 = vld [vmem:[%s3050_s11 + $0x40] sm:$0xf] }
  0x55   : > { %v676_v30 = vsel %vm3186_vm7, %v674_v10, %v675_v1  ;;  %v713_v18 = vunpack.c.l.b16 %v673_v26  ;;  %v1052_v40 = vrot.slane %v1050_v9, 5  ;;  %v1058_v29 = vrot.slane %v1056_v14, 5  ;;  %v626_v26 = vld [vmem:[%s3050_s11 + $0x30] sm:$0xe] }
  0x56   : > { %v714_v21 = vunpack.c.l.b16 %v676_v30  ;;  %v1062_v31 = vrot.slane %v1060_v17, 4  ;;  %v1209_v2 = vpack.c.b16 %v1195_v24, %v1194_v23  ;;  %v1066_v41 = vshll.u32 %v3274_v34, 16 }
  0x57   : > { %v1053_v38 = vor.u32 %v1052_v40, %v1049_v28  ;;  %v1074_v49 = vshll.u32 %v2566_v43, 16  ;;  %v1080_v50 = vshll.u32 %v3282_v44, 16  ;;  %v1084_v52 = vshrl.u32 %v3282_v44, 16 }
  0x58   : > { %2582 = vmatmul.msk.bf16.vlgmr.msrb.gmra.mxu0 %vm428_vm3, %v1208_v48  ;;  %v726_v32 = vpack.c.b16 %v714_v21, %v713_v18  ;;  %v1063_v39 = vor.u32 %v1062_v31, %v1058_v29  ;;  %v1068_v12 = vrot.slane %v1066_v41, 5  ;;  %v1071_v48 = vshrl.u32 %v2566_v43, 16  ;;  %v3317_v43 = vld [vmem:[%s3050_s11 + $0x44] sm:$0x1] }
  0x59   : > { %v1054_v45 = vrot.slane %v1053_v38, 4  ;;  %v1076_v58 = vrot.slane %v1074_v49, 5  ;;  %v1082_v59 = vrot.slane %v1080_v50, 5  ;;  %v1086_v8 = vrot.slane %v1084_v52, 4  ;;  %v2741_v49 = vld [vmem:[%s3050_s11 + $0x30] sm:$0xff] }
  0x5a   : > { %2476 = vmatmul.msk.bf16.gmra.mxu1 %vm428_vm3, %v2738_v55  ;;  %v1064_v47 = vrot.slane %v1063_v39, 4  ;;  %v1073_v55 = vrot.slane %v1071_v48, 4  ;;  %v1104_v21 = vshll.u32 %v3302_v13, 16  ;;  %v679_v23 = vrot.slane %v3064_v19, 5 }
  0x5b   : > { %v1059_v53 = vsel %vm3078_vm4, %v1054_v45, %v1058_v29  ;;  %v1087_v1 = vor.u32 %v1086_v8, %v1082_v59  ;;  %v2487_v40 = vrot.slane %v626_v26, 9  ;;  %v2748_v29 = vld [vmem:[%s3050_s11 + $0x30] sm:$0xff] }
  0x5c   : > { %v1069_v54 = vsel %vm3078_vm4, %v1064_v47, %v1068_v12  ;;  %v1196_v60 = vunpack.c.l.b16 %v1059_v53  ;;  %v1077_v0 = vor.u32 %v1076_v58, %v1073_v55  ;;  %v1106_v38 = vrot.slane %v1104_v21, 5  ;;  %v2572_v55 = vld [vmem:[%s3050_s11 + $0x48] sm:$0xf]  ;;  %v3330_v58 = vld [vmem:[%s3050_s11 + $0x4c] sm:$0xf] }
  0x5d   : > { %v1197_v61 = vunpack.c.l.b16 %v1069_v54  ;;  %v1088_v9 = vrot.slane %v1087_v1, 4  ;;  %v681_v41 = vrot.slane %v679_v23, 4  ;;  %v680_v19 = vsel %vm3186_vm7, %v2487_v40, %v679_v23  ;;  %v2742_v40 = vld [vmem:[%s3050_s11 + $0x3c] sm:$0xff] }
  0x5e   : > { %v1078_v7 = vrot.slane %v1077_v0, 4  ;;  %v1114_v12 = vshll.u32 %v3317_v43, 16  ;;  %v1119_v0 = vshrl.u32 %v2572_v55, 16  ;;  %v1122_v1 = vshll.u32 %v2572_v55, 16 }
  0x5f   : > { %v1210_v5 = vpack.c.b16 %v1197_v61, %v1196_v60  ;;  %v686_v60 = vrot.slane %v3125_v51, 5  ;;  %v627_v61 = vld [vmem:[%s3050_s11 + $0x3c] sm:$0xe] }
  0x60   : > { %2493 = vmatmul.msk.bf16.gmra.mxu2 %vm428_vm3, %v724_v3  ;;  %v1090_v3 = vshll.u32 %v3294_v63, 16  ;;  %v1083_v14 = vsel %vm3078_vm4, %v1078_v7, %v1082_v59  ;;  %v1116_v54 = vrot.slane %v1114_v12, 5  ;;  %v2749_v7 = vld [vmem:[%s3050_s11 + $0x3c] sm:$0xff]  ;;  %v1124_v51 = vrot.slane %v1122_v1, 5 }
  0x61   : > { %v1198_v24 = vunpack.c.l.b16 %v1083_v14  ;;  %v689_v14 = vrot.slane %v3131_v56, 5  ;;  %v3371_v1 = vld [vmem:[%s3050_s11 + $0x5c] sm:$0x1] }
  0x62   : > { %v1092_v10 = vrot.slane %v1090_v3, 5  ;;  %v1128_v3 = vshll.u32 %v3330_v58, 16 }
  0x64   : > { %2550 = vmatmul.msk.bf16.gmra.mxu3 %vm428_vm3, %v2746_v22  ;;  %v1093_v17 = vsel %vm3078_vm4, %v1088_v9, %v1092_v10  ;;  %v1108_v22 = vshrl.u32 %v3302_v13, 16  ;;  %v2488_v10 = vrot.slane %v627_v61, 9  ;;  %v1130_v26 = vrot.slane %v1128_v3, 5 }
  0x65   : > { %v1199_v28 = vunpack.c.l.b16 %v1093_v17  ;;  %v1121_v17 = vrot.slane %v1119_v0, 4  ;;  %v696_v61 = vrot.slane %v3083_v46, 5  ;;  %v1162_v46 = vshll.u32 %v3371_v1, 16 }
  0x66   : > { %v1110_v39 = vrot.slane %v1108_v22, 4  ;;  %v687_v22 = vsel %vm3186_vm7, %v2488_v10, %v686_v60  ;;  %v2743_v10 = vld [vmem:[%s3050_s11 + $0x48] sm:$0xff] }
  0x67   : > { %v1211_v45 = vpack.c.b16 %v1199_v28, %v1198_v24  ;;  %v1125_v24 = vor.u32 %v1124_v51, %v1121_v17 }
  0x68   : > { %2583 = vmatmul.msk.bf16.gmra.mxu0 %vm428_vm3, %v1209_v2  ;;  %v1111_v47 = vor.u32 %v1110_v39, %v1106_v38 }
  0x6a   : > { %2477 = vmatmul.msk.bf16.gmra.mxu1 %vm428_vm3, %v2739_v42  ;;  %v682_v42 = vrot.slane %v3067_v20, 5  ;;  %v715_v20 = vunpack.c.l.b16 %v680_v19  ;;  %v1112_v53 = vrot.slane %v1111_v47, 4 }
  0x6c   : > { %v683_v48 = vsel %vm3186_vm7, %v681_v41, %v682_v42  ;;  %v3356_v42 = vld [vmem:[%s3050_s11 + $0x58] sm:$0xf] }
  0x6d   : > { %v716_v50 = vunpack.c.l.b16 %v683_v48  ;;  %v1152_v47 = vshll.u32 %v3356_v42, 16 }
  0x6f   : > { %v727_v59 = vpack.c.b16 %v716_v50, %v715_v20  ;;  %v1156_v20 = vshrl.u32 %v3356_v42, 16  ;;  %v628_v50 = vld [vmem:[%s3050_s11 + $0x48] sm:$0xe] }
  0x70   : > { %2494 = vmatmul.msk.bf16.gmra.mxu2 %vm428_vm3, %v725_v57  ;;  %v2569_v57 = vld [vmem:[%s3050_s11 + $0x3c] sm:$0xf] }
  0x71   : > { %v1095_v30 = vshrl.u32 %v2569_v57, 16  ;;  %v1098_v18 = vshll.u32 %v2569_v57, 16  ;;  %v688_v57 = vrot.slane %v686_v60, 4  ;;  %v1158_v0 = vrot.slane %v1156_v20, 4 }
  0x73   : > { %v1097_v31 = vrot.slane %v1095_v30, 4  ;;  %v1100_v2 = vrot.slane %v1098_v18, 5  ;;  %v3344_v18 = vld [vmem:[%s3050_s11 + $0x50] sm:$0x1]  ;;  %v690_v23 = vsel %vm3186_vm7, %v688_v57, %v689_v14 }
  0x74   : > { %2551 = vmatmul.msk.bf16.gmra.mxu3 %vm428_vm3, %v2747_v25  ;;  %v1117_v25 = vsel %vm3078_vm4, %v1112_v53, %v1116_v54  ;;  %v1138_v56 = vshll.u32 %v3344_v18, 16  ;;  %v2750_v54 = vld [vmem:[%s3050_s11 + $0x48] sm:$0xff] }
  0x75   : > { %v1201_v9 = vunpack.c.l.b16 %v1117_v25  ;;  %v2489_v25 = vrot.slane %v628_v50, 9  ;;  %v3404_v50 = vld [vmem:[%s3050_s11 + $0x68] sm:$0x1] }
  0x76   : > { %v1140_v41 = vrot.slane %v1138_v56, 5 }
  0x78   : > { %2584 = vmatmul.msk.bf16.gmra.mxu0 %vm428_vm3, %v1210_v5  ;;  %v1132_v5 = vshrl.u32 %v3330_v58, 16 }
  0x7a   : > { %2478 = vmatmul.msk.bf16.gmra.mxu1 %vm428_vm3, %v2740_v6  ;;  %v1134_v30 = vrot.slane %v1132_v5, 4 }
  0x7c   : > { %v1135_v28 = vor.u32 %v1134_v30, %v1130_v26  ;;  %v2578_v30 = vld [vmem:[%s3050_s11 + $0x60] sm:$0xf] }
  0x7e   : > { %v1136_v39 = vrot.slane %v1135_v28, 4  ;;  %v1170_v28 = vshll.u32 %v2578_v30, 16 }
  0x80   : > { %2495 = vmatmul.msk.bf16.gmra.mxu2 %vm428_vm3, %v726_v32  ;;  %v1101_v32 = vor.u32 %v1100_v2, %v1097_v31  ;;  %v718_v31 = vunpack.c.l.b16 %v690_v23  ;;  %v2575_v2 = vld [vmem:[%s3050_s11 + $0x54] sm:$0xf]  ;;  %v1141_v48 = vsel %vm3078_vm4, %v1136_v39, %v1140_v41 }
  0x81   : > { %v1146_v19 = vshll.u32 %v2575_v2, 16 }
  0x82   : > { %v1102_v52 = vrot.slane %v1101_v32, 4 }
  0x83   : > { %v1148_v53 = vrot.slane %v1146_v19, 5 }
  0x84   : > { %2552 = vmatmul.msk.bf16.gmra.mxu3 %vm428_vm3, %v2748_v29  ;;  %v1107_v8 = vsel %vm3078_vm4, %v1102_v52, %v1106_v38  ;;  %v717_v29 = vunpack.c.l.b16 %v687_v22  ;;  %v1126_v38 = vrot.slane %v1125_v24, 4  ;;  %v1167_v24 = vshrl.u32 %v2578_v30, 16 }
  0x85   : > { %v1200_v6 = vunpack.c.l.b16 %v1107_v8  ;;  %v1154_v8 = vrot.slane %v1152_v47, 5  ;;  %v1172_v47 = vrot.slane %v1170_v28, 5 }
  0x86   : > { %v728_v32 = vpack.c.b16 %v718_v31, %v717_v29  ;;  %v1131_v12 = vsel %vm3078_vm4, %v1126_v38, %v1130_v26  ;;  %v1164_v26 = vrot.slane %v1162_v46, 5  ;;  %v700_v31 = vrot.slane %v3142_v15, 5  ;;  %v629_v38 = vld [vmem:[%s3050_s11 + $0x54] sm:$0xe] }
  0x87   : > { %v1212_v21 = vpack.c.b16 %v1201_v9, %v1200_v6  ;;  %v1202_v55 = vunpack.c.l.b16 %v1131_v12  ;;  %v1159_v9 = vor.u32 %v1158_v0, %v1154_v8  ;;  %v703_v15 = vrot.slane %v3145_v16, 5  ;;  %v2744_v0 = vld [vmem:[%s3050_s11 + $0x54] sm:$0xff] }
  0x88   : > { %2585 = vmatmul.msk.bf16.gmra.mxu0 %vm428_vm3, %v1211_v45  ;;  %v1143_v45 = vshrl.u32 %v2575_v2, 16 }
  0x89   : > { %v1160_v51 = vrot.slane %v1159_v9, 4 }
  0x8a   : > { %2479 = vmatmul.msk.bf16.gmra.mxu1 %vm428_vm3, %v2741_v49  ;;  %v693_v49 = vrot.slane %v3074_v35, 5  ;;  %v1145_v52 = vrot.slane %v1143_v45, 4  ;;  %v2751_v45 = vld [vmem:[%s3050_s11 + $0x54] sm:$0xff] }
  0x8c   : > { %v695_v60 = vrot.slane %v693_v49, 4  ;;  %v1149_v35 = vor.u32 %v1148_v53, %v1145_v52  ;;  %v694_v6 = vsel %vm3186_vm7, %v2489_v25, %v693_v49  ;;  %v702_v49 = vrot.slane %v700_v31, 4 }
  0x8d   : > { %v719_v14 = vunpack.c.l.b16 %v694_v6 }
  0x8e   : > { %v1150_v57 = vrot.slane %v1149_v35, 4  ;;  %v704_v25 = vsel %vm3186_vm7, %v702_v49, %v703_v15  ;;  %v2752_v49 = vld [vmem:[%s3050_s11 + $0x60] sm:$0xff] }
  0x8f   : > { %v722_v46 = vunpack.c.l.b16 %v704_v25 }
  0x90   : > { %2496 = vmatmul.msk.bf16.gmra.mxu2 %vm428_vm3, %v727_v59  ;;  %v1203_v59 = vunpack.c.l.b16 %v1141_v48  ;;  %v1155_v22 = vsel %vm3078_vm4, %v1150_v57, %v1154_v8  ;;  %v2490_v48 = vrot.slane %v629_v38, 9 }
  0x91   : > { %v1204_v39 = vunpack.c.l.b16 %v1155_v22  ;;  %v1345_v22 = vrot.slane %v3191_v37, 5 }
  0x92   : > { %v1213_v3 = vpack.c.b16 %v1203_v59, %v1202_v55  ;;  %v2672_v59 = vld [vmem:[%s3050_s11 + $0x18] sm:$0xf]  ;;  %v701_v8 = vsel %vm3186_vm7, %v2490_v48, %v700_v31 }
  0x93   : > { %v1690_v6 = vshrl.u32 %v2672_v59, 16  ;;  %v721_v9 = vunpack.c.l.b16 %v701_v8 }
  0x94   : > { %2553 = vmatmul.msk.bf16.gmra.mxu3 %vm428_vm3, %v2749_v7  ;;  %v697_v7 = vsel %vm3186_vm7, %v695_v60, %v696_v61  ;;  %v1186_v60 = vshll.u32 %v3404_v50, 16  ;;  %v3418_v61 = vld [vmem:[%s3050_s11 + $0x1c] sm:$0xf] }
  0x95   : > { %v720_v17 = vunpack.c.l.b16 %v697_v7  ;;  %v1693_v7 = vshll.u32 %v2672_v59, 16  ;;  %v1699_v57 = vshll.u32 %v3418_v61, 16  ;;  %v1692_v28 = vrot.slane %v1690_v6, 4 }
  0x96   : > { %v1188_v30 = vrot.slane %v1186_v60, 5  ;;  %v2033_v6 = vrot.slane %v3418_v61, 5 }
  0x97   : > { %v729_v23 = vpack.c.b16 %v720_v17, %v719_v14  ;;  %v1703_v14 = vshrl.u32 %v3418_v61, 16  ;;  %v1701_v31 = vrot.slane %v1699_v57, 5 }
  0x98   : > { %2586 = vmatmul.msk.bf16.gmra.mxu0 %vm428_vm3, %v1212_v21  ;;  %v3385_v21 = vld [vmem:[%s3050_s11 + $0x64] sm:$0xf] }
  0x99   : > { %v1176_v56 = vshll.u32 %v3385_v21, 16  ;;  %v1180_v2 = vshrl.u32 %v3385_v21, 16 }
  0x9a   : > { %2480 = vmatmul.msk.bf16.gmra.mxu1 %vm428_vm3, %v2742_v40  ;;  %v1165_v40 = vsel %vm3078_vm4, %v1160_v51, %v1164_v26 }
  0x9b   : > { %v1205_v19 = vunpack.c.l.b16 %v1165_v40  ;;  %v1178_v12 = vrot.slane %v1176_v56, 5  ;;  %v1182_v20 = vrot.slane %v1180_v2, 4  ;;  %v1695_v56 = vrot.slane %v1693_v7, 5 }
  0x9c   : > { %v730_v40 = vpack.c.b16 %v722_v46, %v721_v9  ;;  %v1705_v2 = vrot.slane %v1703_v14, 4  ;;  %v2675_v46 = vld [vmem:[%s3050_s11 + $0x24] sm:$0xf] }
  0x9d   : > { %v1183_v16 = vor.u32 %v1182_v20, %v1178_v12  ;;  %v1696_v48 = vor.u32 %v1695_v56, %v1692_v28  ;;  %v2591_v28 = vld [vmem:[%s3050_s11 + $0x18] sm:$0xe]  ;;  %v1714_v56 = vshrl.u32 %v2675_v46, 16 }
  0x9e   : > { %v1706_v20 = vor.u32 %v1705_v2, %v1701_v31 }
  0x9f   : > { %v1184_v26 = vrot.slane %v1183_v16, 4  ;;  %v1697_v25 = vrot.slane %v1696_v48, 4 }
  0xa0   : > { %2497 = vmatmul.msk.bf16.gmra.mxu2 %vm428_vm3, %v728_v32  ;;  %v1169_v32 = vrot.slane %v1167_v24, 4  ;;  %v1707_v60 = vrot.slane %v1706_v20, 4 }
  0xa1   : > { %v1189_v37 = vsel %vm3078_vm4, %v1184_v26, %v1188_v30  ;;  %v1349_v30 = vrot.slane %v3222_v4, 5 }
  0xa2   : > { %v1173_v55 = vor.u32 %v1172_v47, %v1169_v32 }
  0xa4   : > { %2554 = vmatmul.msk.bf16.gmra.mxu3 %vm428_vm3, %v2750_v54  ;;  %v1214_v54 = vpack.c.b16 %v1205_v19, %v1204_v39  ;;  %v1174_v51 = vrot.slane %v1173_v55, 4 }
  0xa5   : > { %v3374_v5 = vpop.f32.mrf.mxu1 }
  0xa6   : > { %v1179_v39 = vsel %vm3078_vm4, %v1174_v51, %v1178_v12  ;;  %v1207_v12 = vunpack.c.l.b16 %v1189_v37  ;;  %v1702_v51 = vsel %vm3078_vm4, %v1697_v25, %v1701_v31  ;;  %v1351_v37 = vrot.slane %v1349_v30, 4 }
  0xa7   : > { %v1206_v15 = vunpack.c.l.b16 %v1179_v39  ;;  %v2599_v39 = vrot.slane %v2591_v28, 9 }
  0xa8   : > { %2587 = vmatmul.msk.bf16.gmra.mxu0 %vm428_vm3, %v1213_v3  ;;  %v1342_v3 = vrot.slane %v3181_v27, 5 }
  0xa9   : > { %v1215_v16 = vpack.c.b16 %v1207_v12, %v1206_v15  ;;  %v1716_v12 = vrot.slane %v1714_v56, 4 }
  0xaa   : > { %2481 = vmatmul.msk.bf16.gmra.mxu1 %vm428_vm3, %v2743_v10  ;;  %v2590_v10 = vld [vmem:[%s3050_s11 + $0xc] sm:$0xe]  ;;  %v1344_v24 = vrot.slane %v1342_v3, 4 }
  0xac   : > { %v1346_v47 = vsel %vm3186_vm7, %v1344_v24, %v1345_v22 }
  0xad   : > { %v3393_v29 = vpop.f32.mrf.mxu1  ;;  %v1399_v59 = vunpack.c.l.b16 %v1346_v47  ;;  %v1883_v47 = vunpack.c.l.b16 %v1702_v51 }
  0xaf   : > { %v3398_v41 = vpop.f32.mrf.mxu2 }
  0xb0   : > { %2498 = vmatmul.msk.bf16.gmra.mxu2 %vm428_vm3, %v729_v23  ;;  %v2598_v23 = vrot.slane %v2590_v10, 9  ;;  %v3458_v10 = vld [vmem:[%s3050_s11 + $0x28] sm:$0xf] }
  0xb1   : > { %v1723_v2 = vshll.u32 %v3458_v10, 16  ;;  %v1727_v31 = vshrl.u32 %v3458_v10, 16 }
  0xb2   : > { %v1343_v32 = vsel %vm3186_vm7, %v2598_v23, %v1342_v3  ;;  %v2705_v3 = vld [vmem:[%s3050_s11 + $0x18] sm:$0xe]  ;;  %v2035_v23 = vrot.slane %v2033_v6, 4 }
  0xb3   : > { %v3406_v52 = vpop.f32.mrf.mxu0  ;;  %v3408_v53 = vpop.f32.mrf.mxu3  ;;  %v1398_v55 = vunpack.c.l.b16 %v1343_v32  ;;  %v2713_v26 = vrot.slane %v2705_v3, 9  ;;  %v2753_v32 = vld [vmem:[%s3050_s11 + $0x18] sm:$0xff] }
  0xb4   : > { %2555 = vmatmul.msk.bf16.gmra.mxu3 %vm428_vm3, %v2751_v45  ;;  %v2674_v45 = vld [vmem:[%s3050_s11 + $0x20] sm:$0x1] }
  0xb5   : > { %v1414_v9 = vpack.c.b16 %v1399_v59, %v1398_v55  ;;  %v2036_v24 = vrot.slane %v2674_v45, 5  ;;  %v1729_v55 = vrot.slane %v1727_v31, 4  ;;  %v3484_v59 = vld [vmem:[%s3050_s11 + $0x2c] sm:$0x1] }
  0xb6   : > { %v1733_v51 = vshll.u32 %v3484_v59, 16 }
  0xb7   : > { %v3421_v35 = vpop.f32.mrf.mxu1  ;;  %v3428_v17 = vpop.f32.mrf.mxu2 }
  0xb8   : > { %2588 = vmatmul.msk.bf16.gmra.mxu0 %vm428_vm3, %v1214_v54  ;;  %v1709_v54 = vshll.u32 %v2674_v45, 16  ;;  %v2034_v45 = vsel %vm3186_vm7, %v2713_v26, %v2033_v6 }
  0xb9   : > { %v2089_v3 = vunpack.c.l.b16 %v2034_v45 }
  0xba   : > { %2482 = vmatmul.msk.bf16.gmra.mxu1 %vm428_vm3, %v2744_v0  ;;  %v1711_v0 = vrot.slane %v1709_v54, 5  ;;  %v1725_v54 = vrot.slane %v1723_v2, 5 }
  0xbb   : > { %v3432_v27 = vpop.f32.mrf.mxu0  ;;  %v3434_v38 = vpop.f32.mrf.mxu3 }
  0xbc   : > { %v1712_v22 = vsel %vm3078_vm4, %v1707_v60, %v1711_v0 }
  0xbd   : > { %v1884_v48 = vunpack.c.l.b16 %v1712_v22 }
  0xbf   : > { %v3441_v19 = vpop.f32.mrf.mxu1  ;;  %v1899_v0 = vpack.c.b16 %v1884_v48, %v1883_v47 }
  0xc0   : > { %2499 = vmatmul.msk.bf16.gmra.mxu2 %vm428_vm3, %v730_v40  ;;  %v1717_v40 = vshll.u32 %v2675_v46, 16 }
  0xc2   : > { %v1719_v20 = vrot.slane %v1717_v40, 5  ;;  %v3499_v40 = vld [vmem:[%s3050_s11 + $0x34] sm:$0xf] }
  0xc3   : > { %v3449_v8 = vpop.f32.mrf.mxu2 }
  0xc4   : > { %2556 = vmatmul.msk.bf16.gmra.mxu3 %vm428_vm3, %v2752_v49  ;;  %v2037_v49 = vsel %vm3186_vm7, %v2035_v23, %v2036_v24  ;;  %v1720_v46 = vor.u32 %v1719_v20, %v1716_v12  ;;  %v2706_v24 = vld [vmem:[%s3050_s11 + $0x24] sm:$0xe]  ;;  %v1356_v12 = vrot.slane %v3256_v62, 5  ;;  %v1747_v20 = vshll.u32 %v3499_v40, 16 }
  0xc5   : > { %v3454_v7 = vpop.f32.mrf.mxu0  ;;  %v2090_v6 = vunpack.c.l.b16 %v2037_v49 }
  0xc6   : > { %v1721_v31 = vrot.slane %v1720_v46, 4 }
  0xc7   : > { %v3460_v57 = vpop.f32.mrf.mxu3  ;;  %v582_v14 = vpop.f32.mrf.mxu1  ;;  %v2105_v28 = vpack.c.b16 %v2090_v6, %v2089_v3  ;;  %v2043_v3 = vrot.slane %v3484_v59, 5 }
  0xc8   : > { %2589 = vmatmul.msk.bf16.gmra.mxu0 %vm428_vm3, %v1215_v16  ;;  %v583_v61 = vadd.f32 %v582_v14, %v3406_v52  ;;  %v1352_v52 = vrot.slane %v3241_v11, 5  ;;  %v1350_v16 = vsel %vm3186_vm7, %v2599_v39, %v1349_v30  ;;  %v1730_v14 = vor.u32 %v1729_v55, %v1725_v54  ;;  %v2678_v30 = vld [vmem:[%s3050_s11 + $0x30] sm:$0xf] }
  0xc9   : > { %v1400_v26 = vunpack.c.l.b16 %v1350_v16  ;;  %v1738_v47 = vshrl.u32 %v2678_v30, 16  ;;  %v1741_v48 = vshll.u32 %v2678_v30, 16  ;;  %v1359_v55 = vrot.slane %v3274_v34, 5 }
  0xca   : > { %2607 = vmatmul.msk.bf16.vlgmr.msra.gmra.mxu1 %vm428_vm3, %v1414_v9  ;;  %v1353_v60 = vsel %vm3186_vm7, %v1351_v37, %v1352_v52  ;;  %v1731_v39 = vrot.slane %v1730_v14, 4  ;;  %v2040_v37 = vrot.slane %v3458_v10, 5  ;;  %v2592_v10 = vld [vmem:[%s3050_s11 + $0x24] sm:$0xe] }
  0xcb   : > { %v3473_v4 = vpop.f32.mrf.mxu2  ;;  %v1401_v22 = vunpack.c.l.b16 %v1353_v60  ;;  %v1726_v60 = vsel %vm3078_vm4, %v1721_v31, %v1725_v54  ;;  %v1740_v6 = vrot.slane %v1738_v47, 4  ;;  %v1743_v46 = vrot.slane %v1741_v48, 5 }
  0xcc   : > { %v2042_v62 = vrot.slane %v2040_v37, 4  ;;  %v1749_v54 = vrot.slane %v1747_v20, 5  ;;  %v1885_v30 = vunpack.c.l.b16 %v1726_v60 }
  0xcd   : > { %v3481_v15 = vpop.f32.mrf.mxu0  ;;  %v1415_v52 = vpack.c.b16 %v1401_v22, %v1400_v26  ;;  %v1358_v26 = vrot.slane %v1356_v12, 4 }
  0xce   : > { %v2044_v31 = vsel %vm3186_vm7, %v2042_v62, %v2043_v3  ;;  %v2707_v3 = vld [vmem:[%s3050_s11 + $0x30] sm:$0xe] }
  0xcf   : > { %v3486_v25 = vpop.f32.mrf.mxu3  ;;  %v584_v11 = vpop.f32.mrf.mxu1 }
  0xd0   : > { %2664 = vmatmul.msk.bf16.vlgmr.msra.gmra.mxu2 %vm428_vm3, %v2753_v32  ;;  %v585_v9 = vadd.f32 %v584_v11, %v3432_v27  ;;  %v1735_v27 = vrot.slane %v1733_v51, 5  ;;  %v2714_v32 = vrot.slane %v2706_v24, 9  ;;  %v2600_v51 = vrot.slane %v2592_v10, 9  ;;  %v2754_v24 = vld [vmem:[%s3050_s11 + $0x24] sm:$0xff] }
  0xd2   : > { %v2041_v34 = vsel %vm3186_vm7, %v2714_v32, %v2040_v37  ;;  %v1360_v32 = vsel %vm3186_vm7, %v1358_v26, %v1359_v55 }
  0xd3   : > { %v767_v23 = vpop.f32.mrf.mxu2 }
  0xd4   : > { %2697 = vmatmul.msk.bf16.vlgmr.msra.gmra.mxu3 %vm428_vm3, %v1899_v0  ;;  %v807_v56 = vadd.f32 %v767_v23, %v583_v61  ;;  %v1751_v61 = vshrl.u32 %v3499_v40, 16  ;;  %v1736_v0 = vsel %vm3078_vm4, %v1731_v39, %v1735_v27  ;;  %v2091_v39 = vunpack.c.l.b16 %v2041_v34 }
  0xd5   : > { %v1252_v2 = vpop.f32.mrf.mxu0  ;;  %v1744_v27 = vor.u32 %v1743_v46, %v1740_v6  ;;  %v2047_v46 = vrot.slane %v3499_v40, 5 }
  0xd6   : > { %v1753_v22 = vrot.slane %v1751_v61, 4 }
  0xd7   : > { %v918_v45 = vpop.f32.mrf.mxu3  ;;  %v587_v49 = vpop.f32.mrf.mxu1 }
  0xd8   : > { %2722 = vmatmul.msk.bf16.vlgmr.msra.gmra.mxu0 %vm428_vm3, %v2105_v28  ;;  %v958_v11 = vadd.f32 %v918_v45, %v807_v56  ;;  %v588_v16 = vadd.f32 %v587_v49, %v3454_v7  ;;  %v1886_v28 = vunpack.c.l.b16 %v1736_v0  ;;  %v3521_v56 = vld [vmem:[%s3050_s11 + $0x38] sm:$0x1]  ;;  %v2092_v49 = vunpack.c.l.b16 %v2044_v31 }
  0xd9   : > { %v1757_v47 = vshll.u32 %v3521_v56, 16 }
  0xda   : > { %2608 = vmatmul.msk.bf16.gmra.mxu1 %vm428_vm3, %v1415_v52  ;;  %v3517_v7 = vadd.f32 %v1252_v2, %v958_v11  ;;  %v1357_v52 = vsel %vm3186_vm7, %v2600_v51, %v1356_v12  ;;  %v1900_v45 = vpack.c.b16 %v1886_v28, %v1885_v30  ;;  %v1403_v11 = vunpack.c.l.b16 %v1360_v32  ;;  %v3539_v51 = vld [vmem:[%s3050_s11 + $0x40] sm:$0xf] }
  0xdb   : > { %v769_v14 = vpop.f32.mrf.mxu2  ;;  %v1402_v61 = vunpack.c.l.b16 %v1357_v52  ;;  %v1745_v12 = vrot.slane %v1744_v27, 4  ;;  %v1759_v0 = vrot.slane %v1757_v47, 5  ;;  %v2106_v55 = vpack.c.b16 %v2092_v49, %v2091_v39  ;;  %v2755_v49 = vld [vmem:[%s3050_s11 + $0x30] sm:$0xff] }
  0xdc   : > { %v808_v23 = vadd.f32 %v769_v14, %v585_v9  ;;  %v1754_v9 = vor.u32 %v1753_v22, %v1749_v54  ;;  %v2681_v14 = vld [vmem:[%s3050_s11 + $0x3c] sm:$0xf]  ;;  %v1363_v30 = vrot.slane %v3282_v44, 5  ;;  %v2049_v27 = vrot.slane %v2047_v46, 4 }
  0xdd   : > { %v1254_v59 = vpop.f32.mrf.mxu0  ;;  %v1762_v31 = vshrl.u32 %v2681_v14, 16  ;;  %v1765_v39 = vshll.u32 %v2681_v14, 16  ;;  %v1366_v52 = vrot.slane %v3294_v63, 5 }
  0xde   : > { %v1755_v60 = vrot.slane %v1754_v9, 4 }
  0xdf   : > { %v920_v37 = vpop.f32.mrf.mxu3  ;;  %v589_v2 = vpop.f32.mrf.mxu1 }
  0xe0   : > { %v959_v48 = vadd.f32 %v920_v37, %v808_v23  ;;  %2665 = vmatmul.msk.bf16.gmra.mxu2 %vm428_vm3, %v2754_v24  ;;  %v590_v20 = vadd.f32 %v589_v2, %v3481_v15  ;;  %v1416_v15 = vpack.c.b16 %v1403_v11, %v1402_v61  ;;  %v1750_v23 = vsel %vm3078_vm4, %v1745_v12, %v1749_v54 }
  0xe1   : > { %v1760_v24 = vsel %vm3078_vm4, %v1755_v60, %v1759_v0  ;;  %v2050_v37 = vrot.slane %v3521_v56, 5  ;;  %v1771_v54 = vshll.u32 %v3539_v51, 16  ;;  %v1775_v2 = vshrl.u32 %v3539_v51, 16  ;;  %v2683_v0 = vld [vmem:[%s3050_s11 + $0x44] sm:$0x1] }
  0xe2   : > { %v3534_v34 = vadd.f32 %v1254_v59, %v959_v48  ;;  %v2593_v59 = vld [vmem:[%s3050_s11 + $0x30] sm:$0xe]  ;;  %v1888_v9 = vunpack.c.l.b16 %v1760_v24  ;;  %v1365_v48 = vrot.slane %v1363_v30, 4  ;;  %v1764_v61 = vrot.slane %v1762_v31, 4  ;;  %v2708_v31 = vld [vmem:[%s3050_s11 + $0x3c] sm:$0xe] }
  0xe3   : > { %v772_v10 = vpop.f32.mrf.mxu2  ;;  %v2601_v47 = vrot.slane %v2593_v59, 9  ;;  %v1767_v11 = vrot.slane %v1765_v39, 5  ;;  %v2051_v63 = vsel %vm3186_vm7, %v2049_v27, %v2050_v37  ;;  %v1773_v12 = vrot.slane %v1771_v54, 5 }
  0xe4   : > { %2698 = vmatmul.msk.bf16.gmra.mxu3 %vm428_vm3, %v1900_v45  ;;  %v809_v62 = vadd.f32 %v772_v10, %v588_v16  ;;  %v2715_v16 = vrot.slane %v2707_v3, 9  ;;  %v1777_v60 = vrot.slane %v1775_v2, 4  ;;  %v1781_v24 = vshll.u32 %v2683_v0, 16  ;;  %v3573_v2 = vld [vmem:[%s3050_s11 + $0x4c] sm:$0xf] }
  0xe5   : > { %v1257_v6 = vpop.f32.mrf.mxu0 }
  0xe6   : > { %v2048_v56 = vsel %vm3186_vm7, %v2715_v16, %v2047_v46  ;;  %v1367_v46 = vsel %vm3186_vm7, %v1365_v48, %v1366_v52  ;;  %v2054_v16 = vrot.slane %v3539_v51, 5  ;;  %v2057_v48 = vrot.slane %v2683_v0, 5 }
  0xe7   : > { %v923_v26 = vpop.f32.mrf.mxu3  ;;  %v592_v22 = vpop.f32.mrf.mxu1  ;;  %v2093_v3 = vunpack.c.l.b16 %v2048_v56  ;;  %v1405_v59 = vunpack.c.l.b16 %v1367_v46 }
  0xe8   : > { %2723 = vmatmul.msk.bf16.gmra.mxu0 %vm428_vm3, %v2106_v55  ;;  %v960_v28 = vadd.f32 %v923_v26, %v809_v62  ;;  %v593_v40 = vadd.f32 %v592_v22, %v3374_v5  ;;  %v1887_v5 = vunpack.c.l.b16 %v1750_v23  ;;  %v1768_v22 = vor.u32 %v1767_v11, %v1764_v61 }
  0xe9   : > { %v1778_v23 = vor.u32 %v1777_v60, %v1773_v12  ;;  %v2056_v51 = vrot.slane %v2054_v16, 4  ;;  %v1370_v11 = vrot.slane %v3302_v13, 5 }
  0xea   : > { %2609 = vmatmul.msk.bf16.gmra.mxu1 %vm428_vm3, %v1416_v15  ;;  %v3554_v44 = vadd.f32 %v1257_v6, %v960_v28  ;;  %v1901_v62 = vpack.c.b16 %v1888_v9, %v1887_v5  ;;  %v2094_v15 = vunpack.c.l.b16 %v2051_v63  ;;  %v1769_v54 = vrot.slane %v1768_v22, 4 }
  0xeb   : > { %v774_v32 = vpop.f32.mrf.mxu2  ;;  %v1783_v5 = vrot.slane %v1781_v24, 5  ;;  %v2716_v9 = vrot.slane %v2708_v31, 9  ;;  %v1799_v63 = vshrl.u32 %v3573_v2, 16  ;;  %v2756_v24 = vld [vmem:[%s3050_s11 + $0x3c] sm:$0xff]  ;;  %v3599_v31 = vld [vmem:[%s3050_s11 + $0x50] sm:$0x1] }
  0xec   : > { %v810_v45 = vadd.f32 %v774_v32, %v590_v20  ;;  %v1364_v20 = vsel %vm3186_vm7, %v2601_v47, %v1363_v30  ;;  %v2684_v30 = vld [vmem:[%s3050_s11 + $0x48] sm:$0xf]  ;;  %v2107_v27 = vpack.c.b16 %v2094_v15, %v2093_v3  ;;  %v1779_v32 = vrot.slane %v1778_v23, 4 }
  0xed   : > { %v1259_v10 = vpop.f32.mrf.mxu0  ;;  %v1404_v28 = vunpack.c.l.b16 %v1364_v20  ;;  %v1774_v0 = vsel %vm3078_vm4, %v1769_v54, %v1773_v12  ;;  %v2055_v13 = vsel %vm3186_vm7, %v2716_v9, %v2054_v16  ;;  %v1372_v15 = vrot.slane %v1370_v11, 4 }
  0xee   : > { %v1784_v3 = vsel %vm3078_vm4, %v1779_v32, %v1783_v5  ;;  %v1801_v22 = vrot.slane %v1799_v63, 4 }
  0xef   : > { %v925_v55 = vpop.f32.mrf.mxu3  ;;  %v594_v6 = vpop.f32.mrf.mxu1  ;;  %v1417_v47 = vpack.c.b16 %v1405_v59, %v1404_v28  ;;  %v1889_v28 = vunpack.c.l.b16 %v1774_v0  ;;  %v1890_v16 = vunpack.c.l.b16 %v1784_v3  ;;  %v2061_v0 = vrot.slane %v3573_v2, 5 }
  0xf0   : > { %v961_v14 = vadd.f32 %v925_v55, %v810_v45  ;;  %2666 = vmatmul.msk.bf16.gmra.mxu2 %vm428_vm3, %v2755_v49  ;;  %v595_v26 = vadd.f32 %v594_v6, %v3393_v29  ;;  %v1786_v45 = vshrl.u32 %v2684_v30, 16  ;;  %v1789_v49 = vshll.u32 %v2684_v30, 16  ;;  %v2594_v55 = vld [vmem:[%s3050_s11 + $0x3c] sm:$0xe] }
  0xf1   : > { %v2058_v6 = vsel %vm3186_vm7, %v2056_v51, %v2057_v48  ;;  %v1902_v9 = vpack.c.b16 %v1890_v16, %v1889_v28  ;;  %v2063_v28 = vrot.slane %v2061_v0, 4  ;;  %v2064_v16 = vrot.slane %v3599_v31, 5 }
  0xf2   : > { %v3575_v52 = vadd.f32 %v1259_v10, %v961_v14  ;;  %v1791_v20 = vrot.slane %v1789_v49, 5  ;;  %v2602_v14 = vrot.slane %v2594_v55, 9  ;;  %v2096_v30 = vunpack.c.l.b16 %v2058_v6  ;;  %v2687_v49 = vld [vmem:[%s3050_s11 + $0x54] sm:$0xf] }
  0xf3   : > { %v777_v39 = vpop.f32.mrf.mxu2  ;;  %v1813_v6 = vshll.u32 %v2687_v49, 16 }
  0xf4   : > { %2699 = vmatmul.msk.bf16.gmra.mxu3 %vm428_vm3, %v1901_v62  ;;  %v811_v37 = vadd.f32 %v777_v39, %v593_v40  ;;  %v1795_v40 = vshll.u32 %v3573_v2, 16  ;;  %v1373_v62 = vrot.slane %v3317_v43, 5  ;;  %v2095_v39 = vunpack.c.l.b16 %v2055_v13 }
  0xf5   : > { %v1262_v29 = vpop.f32.mrf.mxu0  ;;  %v1371_v54 = vsel %vm3186_vm7, %v2602_v14, %v1370_v11  ;;  %v1810_v13 = vshrl.u32 %v2687_v49, 16  ;;  %v1377_v2 = vrot.slane %v3330_v58, 5  ;;  %v1380_v58 = vrot.slane %v3344_v18, 5 }
  0xf6   : > { %v3595_v12 = vrot.slane %v1795_v40, 5  ;;  %v1406_v48 = vunpack.c.l.b16 %v1371_v54  ;;  %v2065_v49 = vsel %vm3186_vm7, %v2063_v28, %v2064_v16  ;;  %v2690_v28 = vld [vmem:[%s3050_s11 + $0x60] sm:$0xf] }
  0xf7   : > { %v928_v56 = vpop.f32.mrf.mxu3  ;;  %v597_v61 = vpop.f32.mrf.mxu1 }
  0xf8   : > { %2724 = vmatmul.msk.bf16.gmra.mxu0 %vm428_vm3, %v2107_v27  ;;  %v962_v10 = vadd.f32 %v928_v56, %v811_v37  ;;  %v598_v60 = vadd.f32 %v597_v61, %v3421_v35  ;;  %v1788_v35 = vrot.slane %v1786_v45, 4  ;;  %v3611_v56 = vld [vmem:[%s3050_s11 + $0x58] sm:$0xf]  ;;  %v2108_v61 = vpack.c.b16 %v2096_v30, %v2095_v39 }
  0xf9   : > { %v1812_v39 = vrot.slane %v1810_v13, 4  ;;  %v1815_v30 = vrot.slane %v1813_v6, 5 }
  0xfa   : > { %2610 = vmatmul.msk.bf16.gmra.mxu1 %vm428_vm3, %v1417_v47  ;;  %v3593_v46 = vadd.f32 %v1262_v29, %v962_v10  ;;  %v1374_v29 = vsel %vm3186_vm7, %v1372_v15, %v1373_v62  ;;  %v1792_v32 = vor.u32 %v1791_v20, %v1788_v35  ;;  %v1805_v47 = vshll.u32 %v3599_v31, 16  ;;  %v2709_v62 = vld [vmem:[%s3050_s11 + $0x48] sm:$0xe] }
  0xfb   : > { %v779_v43 = vpop.f32.mrf.mxu2  ;;  %v1407_v45 = vunpack.c.l.b16 %v1374_v29  ;;  %v1819_v35 = vshll.u32 %v3611_v56, 16  ;;  %v1823_v20 = vshrl.u32 %v3611_v56, 16 }
  0xfc   : > { %v812_v23 = vadd.f32 %v779_v43, %v595_v26  ;;  %v1802_v26 = vor.u32 %v1801_v22, %v3595_v12  ;;  %v1793_v40 = vrot.slane %v1792_v32, 4  ;;  %v1807_v55 = vrot.slane %v1805_v47, 5 }
  0xfd   : > { %v1264_v59 = vpop.f32.mrf.mxu0  ;;  %v1418_v43 = vpack.c.b16 %v1407_v45, %v1406_v48  ;;  %v2717_v22 = vrot.slane %v2709_v62, 9  ;;  %v1379_v32 = vrot.slane %v1377_v2, 4 }
  0xfe   : > { %v1803_v63 = vrot.slane %v1802_v26, 4  ;;  %v3634_v26 = vld [vmem:[%s3050_s11 + $0x5c] sm:$0x1] }
  0xff   : > { %v930_v27 = vpop.f32.mrf.mxu3  ;;  %v599_v37 = vpop.f32.mrf.mxu1  ;;  %v2062_v45 = vsel %vm3186_vm7, %v2717_v22, %v2061_v0  ;;  %v1829_v18 = vshll.u32 %v3634_v26, 16  ;;  %v2710_v22 = vld [vmem:[%s3050_s11 + $0x54] sm:$0xe] }
 0x100   : > { %v963_v5 = vadd.f32 %v930_v27, %v812_v23  ;;  %2667 = vmatmul.msk.bf16.gmra.mxu2 %vm428_vm3, %v2756_v24  ;;  %v600_v51 = vadd.f32 %v599_v37, %v3441_v19  ;;  %v1808_v24 = vsel %vm3078_vm4, %v1803_v63, %v1807_v55  ;;  %v1821_v27 = vrot.slane %v1819_v35, 5 }
 0x101   : > { %v1825_v37 = vrot.slane %v1823_v20, 4  ;;  %v1892_v31 = vunpack.c.l.b16 %v1808_v24  ;;  %v2097_v0 = vunpack.c.l.b16 %v2062_v45  ;;  %v1387_v45 = vrot.slane %v3371_v1, 5 }
 0x102   : > { %v3616_v3 = vadd.f32 %v1264_v59, %v963_v5  ;;  %v2595_v59 = vld [vmem:[%s3050_s11 + $0x48] sm:$0xe] }
 0x103   : > { %v782_v11 = vpop.f32.mrf.mxu2  ;;  %v2603_v29 = vrot.slane %v2595_v59, 9 }
 0x104   : > { %2700 = vmatmul.msk.bf16.gmra.mxu3 %vm428_vm3, %v1902_v9  ;;  %v813_v10 = vadd.f32 %v782_v11, %v598_v60  ;;  %v1798_v60 = vsel %vm3078_vm4, %v1793_v40, %v3595_v12  ;;  %v2757_v9 = vld [vmem:[%s3050_s11 + $0x48] sm:$0xff]  ;;  %v1826_v11 = vor.u32 %v1825_v37, %v1821_v27  ;;  %v2718_v37 = vrot.slane %v2710_v22, 9 }
 0x105   : > { %v1267_v19 = vpop.f32.mrf.mxu0  ;;  %v1891_v47 = vunpack.c.l.b16 %v1798_v60 }
 0x106   : > { %v1827_v6 = vrot.slane %v1826_v11, 4 }
 0x107   : > { %v933_v14 = vpop.f32.mrf.mxu3  ;;  %v602_v15 = vpop.f32.mrf.mxu1  ;;  %v1903_v62 = vpack.c.b16 %v1892_v31, %v1891_v47  ;;  %v2071_v47 = vrot.slane %v3634_v26, 5  ;;  %v2596_v31 = vld [vmem:[%s3050_s11 + $0x54] sm:$0xe] }
 0x108   : > { %2725 = vmatmul.msk.bf16.gmra.mxu0 %vm428_vm3, %v2108_v61  ;;  %v964_v23 = vadd.f32 %v933_v14, %v813_v10  ;;  %v1816_v61 = vor.u32 %v1815_v30, %v1812_v39  ;;  %v1381_v10 = vsel %vm3186_vm7, %v1379_v32, %v1380_v58  ;;  %v603_v35 = vadd.f32 %v602_v15, %v3398_v41  ;;  %v3655_v39 = vld [vmem:[%s3050_s11 + $0x64] sm:$0xf] }
 0x109   : > { %v1831_v14 = vrot.slane %v1829_v18, 5  ;;  %v1834_v32 = vshrl.u32 %v2690_v28, 16 }
 0x10a   : > { %2611 = vmatmul.msk.bf16.gmra.mxu1 %vm428_vm3, %v1418_v43  ;;  %v3630_v12 = vadd.f32 %v1267_v19, %v964_v23  ;;  %v2098_v19 = vunpack.c.l.b16 %v2065_v49  ;;  %v1817_v13 = vrot.slane %v1816_v61, 4  ;;  %v1409_v43 = vunpack.c.l.b16 %v1381_v10 }
 0x10b   : > { %v784_v54 = vpop.f32.mrf.mxu2  ;;  %v1832_v15 = vsel %vm3078_vm4, %v1827_v6, %v1831_v14  ;;  %v1836_v10 = vrot.slane %v1834_v32, 4 }
 0x10c   : > { %v814_v5 = vadd.f32 %v784_v54, %v600_v51  ;;  %v1378_v51 = vsel %vm3186_vm7, %v2603_v29, %v1377_v2  ;;  %v2068_v2 = vrot.slane %v3611_v56, 5  ;;  %v2109_v23 = vpack.c.b16 %v2098_v19, %v2097_v0  ;;  %v2758_v0 = vld [vmem:[%s3050_s11 + $0x54] sm:$0xff] }
 0x10d   : > { %v1269_v48 = vpop.f32.mrf.mxu0  ;;  %v1408_v20 = vunpack.c.l.b16 %v1378_v51  ;;  %v1822_v41 = vsel %vm3078_vm4, %v1817_v13, %v1821_v27  ;;  %v1384_v29 = vrot.slane %v3356_v42, 5  ;;  %v1843_v27 = vshll.u32 %v3655_v39, 16  ;;  %v2692_v13 = vld [vmem:[%s3050_s11 + $0x68] sm:$0x1] }
 0x10e   : > { %v2070_v54 = vrot.slane %v2068_v2, 4  ;;  %v1893_v49 = vunpack.c.l.b16 %v1822_v41  ;;  %v1894_v42 = vunpack.c.l.b16 %v1832_v15  ;;  %v2069_v11 = vsel %vm3186_vm7, %v2718_v37, %v2068_v2 }
 0x10f   : > { %v935_v40 = vpop.f32.mrf.mxu3  ;;  %v604_v63 = vpop.f32.mrf.mxu1  ;;  %v1419_v30 = vpack.c.b16 %v1409_v43, %v1408_v20  ;;  %v1386_v51 = vrot.slane %v1384_v29, 4  ;;  %v2099_v6 = vunpack.c.l.b16 %v2069_v11 }
 0x110   : > { %v965_v55 = vadd.f32 %v935_v40, %v814_v5  ;;  %2668 = vmatmul.msk.bf16.gmra.mxu2 %vm428_vm3, %v2757_v9  ;;  %v1837_v5 = vshll.u32 %v2690_v28, 16  ;;  %v605_v61 = vadd.f32 %v604_v63, %v3428_v17  ;;  %v2604_v40 = vrot.slane %v2596_v31, 9 }
 0x111   : > { %v2072_v1 = vsel %vm3186_vm7, %v2070_v54, %v2071_v47  ;;  %v1845_v17 = vrot.slane %v1843_v27, 5  ;;  %v1853_v28 = vshll.u32 %v2692_v13, 16  ;;  %v2075_v31 = vrot.slane %v3655_v39, 5  ;;  %v2693_v27 = vld [vmem:[%s3050_s11 + $0x6c] sm:$0xf] }
 0x112   : > { %v3652_v16 = vadd.f32 %v1269_v48, %v965_v55  ;;  %v1847_v48 = vshrl.u32 %v3655_v39, 16  ;;  %v1839_v55 = vrot.slane %v1837_v5, 5  ;;  %v2100_v20 = vunpack.c.l.b16 %v2072_v1  ;;  %v2711_v5 = vld [vmem:[%s3050_s11 + $0x60] sm:$0xe] }
 0x113   : > { %v787_v60 = vpop.f32.mrf.mxu2  ;;  %v1385_v14 = vsel %vm3186_vm7, %v2604_v40, %v1384_v29  ;;  %v1855_v32 = vrot.slane %v1853_v28, 5  ;;  %v2597_v40 = vld [vmem:[%s3050_s11 + $0x60] sm:$0xe]  ;;  %v1858_v39 = vshrl.u32 %v2693_v27, 16  ;;  %v1394_v1 = vrot.slane %v3404_v50, 5 }
 0x114   : > { %2701 = vmatmul.msk.bf16.gmra.mxu3 %vm428_vm3, %v1903_v62  ;;  %v815_v24 = vadd.f32 %v787_v60, %v603_v35  ;;  %v1849_v63 = vrot.slane %v1847_v48, 4  ;;  %v1388_v60 = vsel %vm3186_vm7, %v1386_v51, %v1387_v45  ;;  %v1840_v22 = vor.u32 %v1839_v55, %v1836_v10 }
 0x115   : > { %v1272_v59 = vpop.f32.mrf.mxu0  ;;  %v1411_v41 = vunpack.c.l.b16 %v1388_v60  ;;  %v2110_v15 = vpack.c.b16 %v2100_v20, %v2099_v6  ;;  %v1861_v51 = vshll.u32 %v2693_v27, 16  ;;  %v2077_v10 = vrot.slane %v2075_v31, 4 }
 0x116   : > { %v2078_v55 = vrot.slane %v2692_v13, 5  ;;  %v2759_v13 = vld [vmem:[%s3050_s11 + $0x60] sm:$0xff] }
 0x117   : > { %v938_v56 = vpop.f32.mrf.mxu3  ;;  %v607_v58 = vpop.f32.mrf.mxu1 }
 0x118   : > { %2726 = vmatmul.msk.bf16.gmra.mxu0 %vm428_vm3, %v2109_v23  ;;  %v966_v9 = vadd.f32 %v938_v56, %v815_v24  ;;  %v1904_v23 = vpack.c.b16 %v1894_v42, %v1893_v49  ;;  %v1850_v24 = vor.u32 %v1849_v63, %v1845_v17  ;;  %v1841_v56 = vrot.slane %v1840_v22, 4 }
 0x119   : > { %v1391_v42 = vrot.slane %v3385_v21, 5  ;;  %v1860_v22 = vrot.slane %v1858_v39, 4 }
 0x11a   : > { %2612 = vmatmul.msk.bf16.gmra.mxu1 %vm428_vm3, %v1419_v30  ;;  %v3672_v18 = vadd.f32 %v1272_v59, %v966_v9  ;;  %v608_v59 = vadd.f32 %v607_v58, %v3449_v8  ;;  %v1410_v30 = vunpack.c.l.b16 %v1385_v14  ;;  %v1851_v29 = vrot.slane %v1850_v24, 4  ;;  %v3691_v58 = vld [vmem:[%s3050_s11 + $0x70] sm:$0xf]  ;;  %v2695_v24 = vld [vmem:[%s3050_s11 + $0x74] sm:$0x1] }
 0x11b   : > { %v789_v26 = vpop.f32.mrf.mxu2  ;;  %v1846_v49 = vsel %vm3078_vm4, %v1841_v56, %v1845_v17  ;;  %v1393_v20 = vrot.slane %v1391_v42, 4  ;;  %v2082_v39 = vrot.slane %v3691_v58, 5 }
 0x11c   : > { %v816_v62 = vadd.f32 %v789_v26, %v605_v61  ;;  %v1420_v8 = vpack.c.b16 %v1411_v41, %v1410_v30  ;;  %v2719_v61 = vrot.slane %v2711_v5, 9  ;;  %v1856_v26 = vsel %vm3078_vm4, %v1851_v29, %v1855_v32 }
 0x11d   : > { %v1274_v19 = vpop.f32.mrf.mxu0  ;;  %v1896_v6 = vunpack.c.l.b16 %v1856_v26  ;;  %v1877_v5 = vshll.u32 %v2695_v24, 16 }
 0x11e   : > { %v2076_v60 = vsel %vm3186_vm7, %v2719_v61, %v2075_v31 }
 0x11f   : > { %v940_v35 = vpop.f32.mrf.mxu3  ;;  %v609_v43 = vpop.f32.mrf.mxu1 }
 0x120   : > { %v967_v2 = vadd.f32 %v940_v35, %v816_v62  ;;  %2669 = vmatmul.msk.bf16.gmra.mxu2 %vm428_vm3, %v2758_v0  ;;  %v1867_v62 = vshll.u32 %v3691_v58, 16  ;;  %v1871_v0 = vshrl.u32 %v3691_v58, 16  ;;  %v610_v21 = vadd.f32 %v609_v43, %v3473_v4 }
 0x121   : > { %v2605_v35 = vrot.slane %v2597_v40, 9  ;;  %v2079_v4 = vsel %vm3186_vm7, %v2077_v10, %v2078_v55  ;;  %v1879_v40 = vrot.slane %v1877_v5, 5  ;;  %v2712_v10 = vld [vmem:[%s3050_s11 + $0x6c] sm:$0xe] }
 0x122   : > { %v3686_v9 = vadd.f32 %v1274_v19, %v967_v2  ;;  %v1895_v19 = vunpack.c.l.b16 %v1846_v49  ;;  %v1863_v2 = vrot.slane %v1861_v51, 5  ;;  %v1869_v43 = vrot.slane %v1867_v62, 5 }
 0x123   : > { %v792_v37 = vpop.f32.mrf.mxu2  ;;  %v1392_v41 = vsel %vm3186_vm7, %v2605_v35, %v1391_v42 }
 0x124   : > { %2702 = vmatmul.msk.bf16.gmra.mxu3 %vm428_vm3, %v1904_v23  ;;  %v817_v54 = vadd.f32 %v792_v37, %v608_v59  ;;  %v1873_v23 = vrot.slane %v1871_v0, 4  ;;  %v2101_v59 = vunpack.c.l.b16 %v2076_v60  ;;  %v1905_v56 = vpack.c.b16 %v1896_v6, %v1895_v19 }
 0x125   : > { %v1277_v47 = vpop.f32.mrf.mxu0  ;;  %v1864_v29 = vor.u32 %v1863_v2, %v1860_v22  ;;  %v1412_v31 = vunpack.c.l.b16 %v1392_v41 }
 0x126   : > { %v1874_v32 = vor.u32 %v1873_v23, %v1869_v43 }
 0x127   : > { %v943_v48 = vpop.f32.mrf.mxu3  ;;  %v612_v45 = vpop.f32.mrf.mxu1  ;;  %v1865_v42 = vrot.slane %v1864_v29, 4 }
 0x128   : > { %2727 = vmatmul.msk.bf16.gmra.mxu0 %vm428_vm3, %v2110_v15  ;;  %v968_v11 = vadd.f32 %v943_v48, %v817_v54  ;;  %v1395_v15 = vsel %vm3186_vm7, %v1393_v20, %v1394_v1  ;;  %v2102_v54 = vunpack.c.l.b16 %v2079_v4  ;;  %v1875_v26 = vrot.slane %v1874_v32, 4  ;;  %v2760_v20 = vld [vmem:[%s3050_s11 + $0x6c] sm:$0xff]  ;;  %s2298_s11 = scalar_lea.sflag [#allocation3], %s3752_s29 }
 0x129   : > { %v1413_v27 = vunpack.c.l.b16 %v1395_v15  ;;  %v1870_v62 = vsel %vm3078_vm4, %v1865_v42, %v1869_v43  ;;  %v2720_v1 = vrot.slane %v2712_v10, 9 }
 0x12a   : > { %2613 = vmatmul.msk.bf16.gmra.mxu1 %vm428_vm3, %v1420_v8  ;;  %v3705_v17 = vadd.f32 %v1277_v47, %v968_v11  ;;  %v613_v47 = vadd.f32 %v612_v45, %v3408_v53  ;;  %v2111_v49 = vpack.c.b16 %v2102_v54, %v2101_v59  ;;  %v1880_v0 = vsel %vm3078_vm4, %v1875_v26, %v1879_v40 }
 0x12b   : > { %v794_v63 = vpop.f32.mrf.mxu2  ;;  %v1421_v51 = vpack.c.b16 %v1413_v27, %v1412_v31  ;;  %v2083_v22 = vsel %vm3186_vm7, %v2720_v1, %v2082_v39 }
 0x12c   : > { %v818_v14 = vadd.f32 %v794_v63, %v610_v21  ;;  %v2084_v21 = vrot.slane %v2082_v39, 4  ;;  %v2085_v63 = vrot.slane %v2695_v24, 5  ;;  %v2103_v43 = vunpack.c.l.b16 %v2083_v22 }
 0x12d   : > { %v1279_v50 = vpop.f32.mrf.mxu0 }
 0x12e   : > { %v2086_v36 = vsel %vm3186_vm7, %v2084_v21, %v2085_v63 }
 0x12f   : > { %v945_v28 = vpop.f32.mrf.mxu3  ;;  %v614_v30 = vpop.f32.mrf.mxu1  ;;  %v2104_v23 = vunpack.c.l.b16 %v2086_v36 }
 0x130   : > { %v969_v37 = vadd.f32 %v945_v28, %v818_v14  ;;  %2670 = vmatmul.msk.bf16.gmra.mxu2 %vm428_vm3, %v2759_v13  ;;  %v615_v19 = vadd.f32 %v614_v30, %v3434_v38  ;;  %v1897_v14 = vunpack.c.l.b16 %v1870_v62  ;;  %v1898_v13 = vunpack.c.l.b16 %v1880_v0 }
 0x131   : > { %v2112_v30 = vpack.c.b16 %v2104_v23, %v2103_v43 }
 0x132   : > { %v3719_v8 = vadd.f32 %v1279_v50, %v969_v37  ;;  %v1906_v38 = vpack.c.b16 %v1898_v13, %v1897_v14 }
 0x133   : > { %v797_v48 = vpop.f32.mrf.mxu2 }
 0x134   : > { %2703 = vmatmul.msk.bf16.gmra.mxu3 %vm428_vm3, %v1905_v56  ;;  %v819_v61 = vadd.f32 %v797_v48, %v613_v47 }
 0x135   : > { %v1282_v11 = vpop.f32.mrf.mxu0 }
 0x137   : > { %v948_v55 = vpop.f32.mrf.mxu3  ;;  %v617_v53 = vpop.f32.mrf.mxu1 }
 0x138   : > { %2728 = vmatmul.msk.bf16.gmra.mxu0 %vm428_vm3, %v2111_v49  ;;  %v970_v45 = vadd.f32 %v948_v55, %v819_v61  ;;  %v618_v24 = vadd.f32 %v617_v53, %v3460_v57 }
 0x13a   : > { %2614 = vmatmul.msk.bf16.gmra.mxu1 %vm428_vm3, %v1421_v51  ;;  %v3731_v58 = vadd.f32 %v1282_v11, %v970_v45 }
 0x13b   : > { %v799_v6 = vpop.f32.mrf.mxu2 }
 0x13c   : > { %v820_v35 = vadd.f32 %v799_v6, %v615_v19 }
 0x13d   : > { %v1284_v60 = vpop.f32.mrf.mxu0 }
 0x13f   : > { %v950_v2 = vpop.f32.mrf.mxu3  ;;  %v619_v50 = vpop.f32.mrf.mxu1 }
 0x140   : > { %v971_v4 = vadd.f32 %v950_v2, %v820_v35  ;;  %2671 = vmatmul.msk.bf16.gmra.mxu2 %vm428_vm3, %v2760_v20  ;;  %v620_v54 = vadd.f32 %v619_v50, %v3486_v25 }
 0x142   : > { %v3740_v28 = vadd.f32 %v1284_v60, %v971_v4 }
 0x143   : > { %v802_v59 = vpop.f32.mrf.mxu2 }
 0x144   : > { %2704 = vmatmul.msk.bf16.gmra.mxu3 %vm428_vm3, %v1906_v38  ;;  %v821_v41 = vadd.f32 %v802_v59, %v618_v24 }
 0x145   : > { %v1287_v15 = vpop.f32.mrf.mxu0 }
 0x147   : > { %v953_v33 = vpop.f32.mrf.mxu3  ;;  %v1458_v37 = vpop.f32.mrf.mxu1 }
 0x148   : > { %2729 = vmatmul.msk.bf16.gmra.mxu0 %vm428_vm3, %v2112_v30  ;;  %v972_v56 = vadd.f32 %v953_v33, %v821_v41  ;;  %v1498_v61 = vadd.f32 %v1458_v37, %v3517_v7 }
 0x14a   : > { %v3745_v29 = vadd.f32 %v1287_v15, %v972_v56 }
 0x14b   : > { %v804_v32 = vpop.f32.mrf.mxu2 }
 0x14c   : > { %v822_v5 = vadd.f32 %v804_v32, %v620_v54 }
 0x14d   : > { %v1289_v57 = vpop.f32.mrf.mxu0 }
 0x14f   : > { %v955_v47 = vpop.f32.mrf.mxu3  ;;  %v1460_v31 = vpop.f32.mrf.mxu1 }
 0x150   : > { %v973_v27 = vadd.f32 %v955_v47, %v822_v5  ;;  %v1499_v25 = vadd.f32 %v1460_v31, %v3534_v34 }
 0x152   : > { %v3747_v48 = vadd.f32 %v1289_v57, %v973_v27 }
 0x153   : > { %v1609_v49 = vpop.f32.mrf.mxu2 }
 0x154   : > { %v1649_v11 = vadd.f32 %v1609_v49, %v1498_v61 }
 0x155   : > { %v2149_v42 = vpop.f32.mrf.mxu0 }
 0x157   : > { %v1943_v26 = vpop.f32.mrf.mxu3  ;;  %v1463_v40 = vpop.f32.mrf.mxu1 }
 0x158   : > { %v1983_v39 = vadd.f32 %v1943_v26, %v1649_v11  ;;  %v1500_v7 = vadd.f32 %v1463_v40, %v3554_v44 }
 0x15a   : > { %v2189_v53 = vadd.f32 %v2149_v42, %v1983_v39 }
 0x15b   : > { %v1611_v51 = vpop.f32.mrf.mxu2 }
 0x15c   : > { %v1650_v10 = vadd.f32 %v1611_v51, %v1499_v25  ;;  %v2259_v21 = vmul.f32 %v2189_v53, %v2189_v53 }
 0x15d   : > { %v2151_v55 = vpop.f32.mrf.mxu0 }
 0x15f   : > { %v1945_v45 = vpop.f32.mrf.mxu3  ;;  %v1465_v62 = vpop.f32.mrf.mxu1 }
 0x160   : > { %v1984_v0 = vadd.f32 %v1945_v45, %v1650_v10  ;;  %v1501_v2 = vadd.f32 %v1465_v62, %v3575_v52 }
 0x162   : > { %v2190_v1 = vadd.f32 %v2151_v55, %v1984_v0 }
 0x163   : > { %v1614_v63 = vpop.f32.mrf.mxu2 }
 0x164   : > { %v2765_v19 = vpack.c.bf16 %v2190_v1, %v2189_v53  ;;  %v2237_v6 = vadd.f32 %v2190_v1, %v2189_v53  ;;  %v2260_v34 = vmul.f32 %v2190_v1, %v2190_v1  ;;  %v1651_v35 = vadd.f32 %v1614_v63, %v1500_v7 }
 0x165   : > { %v2154_v20 = vpop.f32.mrf.mxu0 }
 0x166   : > { %2766 = vst [vmem:[%s3756_s4] sm:$0xff] %v2765_v19   ;;  %v2275_v14 = vadd.f32 %v2260_v34, %v2259_v21 }
 0x167   : > { %v1948_v13 = vpop.f32.mrf.mxu3  ;;  %v1468_v60 = vpop.f32.mrf.mxu1 }
 0x168   : > { %v1985_v22 = vadd.f32 %v1948_v13, %v1651_v35  ;;  %v1502_v15 = vadd.f32 %v1468_v60, %v3593_v46 }
 0x16a   : > { %v2191_v36 = vadd.f32 %v2154_v20, %v1985_v22 }
 0x16b   : > { %v1616_v50 = vpop.f32.mrf.mxu2 }
 0x16c   : > { %v2238_v44 = vadd.f32 %v2237_v6, %v2191_v36  ;;  %v2261_v4 = vmul.f32 %v2191_v36, %v2191_v36  ;;  %v1652_v38 = vadd.f32 %v1616_v50, %v1501_v2 }
 0x16d   : > { %v2156_v43 = vpop.f32.mrf.mxu0 }
 0x16e   : > { %v2276_v23 = vadd.f32 %v2275_v14, %v2261_v4 }
 0x16f   : > { %v1950_v24 = vpop.f32.mrf.mxu3  ;;  %v1470_v59 = vpop.f32.mrf.mxu1 }
 0x170   : > { %v1986_v30 = vadd.f32 %v1950_v24, %v1652_v38  ;;  %v1503_v49 = vadd.f32 %v1470_v59, %v3616_v3 }
 0x172   : > { %v2192_v41 = vadd.f32 %v2156_v43, %v1986_v30 }
 0x173   : > { %v1619_v33 = vpop.f32.mrf.mxu2 }
 0x174   : > { %v2770_v37 = vpack.c.bf16 %v2192_v41, %v2191_v36  ;;  %v2239_v56 = vadd.f32 %v2238_v44, %v2192_v41  ;;  %v2262_v54 = vmul.f32 %v2192_v41, %v2192_v41  ;;  %v1653_v32 = vadd.f32 %v1619_v33, %v1502_v15 }
 0x175   : > { %v2159_v5 = vpop.f32.mrf.mxu0 }
 0x176   : > { %2802 = vst [vmem:[%s3756_s4 + $0x8] sm:$0xff] %v2770_v37   ;;  %v2277_v52 = vadd.f32 %v2276_v23, %v2262_v54 }
 0x177   : > { %v1953_v57 = vpop.f32.mrf.mxu3  ;;  %v1473_v47 = vpop.f32.mrf.mxu1 }
 0x178   : > { %v1987_v31 = vadd.f32 %v1953_v57, %v1653_v32  ;;  %v1504_v55 = vadd.f32 %v1473_v47, %v3630_v12 }
 0x17a   : > { %v2193_v27 = vadd.f32 %v2159_v5, %v1987_v31 }
 0x17b   : > { %v1621_v61 = vpop.f32.mrf.mxu2 }
 0x17c   : > { %v2240_v42 = vadd.f32 %v2239_v56, %v2193_v27  ;;  %v2263_v11 = vmul.f32 %v2193_v27, %v2193_v27  ;;  %v1654_v26 = vadd.f32 %v1621_v61, %v1503_v49 }
 0x17d   : > { %v2161_v46 = vpop.f32.mrf.mxu0 }
 0x17e   : > { %v2278_v40 = vadd.f32 %v2277_v52, %v2263_v11 }
 0x17f   : > { %v1955_v25 = vpop.f32.mrf.mxu3  ;;  %v1475_v39 = vpop.f32.mrf.mxu1 }
 0x180   : > { %v1988_v51 = vadd.f32 %v1955_v25, %v1654_v26  ;;  %v1505_v34 = vadd.f32 %v1475_v39, %v3652_v16 }
 0x182   : > { %v2194_v10 = vadd.f32 %v2161_v46, %v1988_v51 }
 0x183   : > { %v1624_v53 = vpop.f32.mrf.mxu2 }
 0x184   : > { %v2775_v45 = vpack.c.bf16 %v2194_v10, %v2193_v27  ;;  %v2241_v62 = vadd.f32 %v2240_v42, %v2194_v10  ;;  %v2264_v0 = vmul.f32 %v2194_v10, %v2194_v10  ;;  %v1655_v1 = vadd.f32 %v1624_v53, %v1504_v55 }
 0x185   : > { %v2164_v7 = vpop.f32.mrf.mxu0 }
 0x186   : > { %2803 = vst [vmem:[%s3756_s4 + $0x10] sm:$0xff] %v2775_v45   ;;  %v2279_v3 = vadd.f32 %v2278_v40, %v2264_v0 }
 0x187   : > { %v1958_v21 = vpop.f32.mrf.mxu3  ;;  %v1478_v63 = vpop.f32.mrf.mxu1 }
 0x188   : > { %v1989_v19 = vadd.f32 %v1958_v21, %v1655_v1  ;;  %v1506_v44 = vadd.f32 %v1478_v63, %v3672_v18 }
 0x18a   : > { %v2195_v6 = vadd.f32 %v2164_v7, %v1989_v19 }
 0x18b   : > { %v1626_v35 = vpop.f32.mrf.mxu2 }
 0x18c   : > { %v2242_v20 = vadd.f32 %v2241_v62, %v2195_v6  ;;  %v2265_v14 = vmul.f32 %v2195_v6, %v2195_v6  ;;  %v1656_v13 = vadd.f32 %v1626_v35, %v1505_v34 }
 0x18d   : > { %v2166_v12 = vpop.f32.mrf.mxu0 }
 0x18e   : > { %v2280_v60 = vadd.f32 %v2279_v3, %v2265_v14 }
 0x18f   : > { %v1960_v22 = vpop.f32.mrf.mxu3  ;;  %v1480_v36 = vpop.f32.mrf.mxu1 }
 0x190   : > { %v1990_v2 = vadd.f32 %v1960_v22, %v1656_v13  ;;  %v1507_v37 = vadd.f32 %v1480_v36, %v3686_v9 }
 0x192   : > { %v2196_v50 = vadd.f32 %v2166_v12, %v1990_v2 }
 0x193   : > { %v1629_v4 = vpop.f32.mrf.mxu2 }
 0x194   : > { %v2780_v38 = vpack.c.bf16 %v2196_v50, %v2195_v6  ;;  %v2243_v43 = vadd.f32 %v2242_v20, %v2196_v50  ;;  %v2266_v23 = vmul.f32 %v2196_v50, %v2196_v50  ;;  %v1657_v24 = vadd.f32 %v1629_v4, %v1506_v44 }
 0x195   : > { %v2169_v59 = vpop.f32.mrf.mxu0 }
 0x196   : > { %2804 = vst [vmem:[%s3756_s4 + $0x18] sm:$0xff] %v2780_v38   ;;  %v2281_v16 = vadd.f32 %v2280_v60, %v2266_v23 }
 0x197   : > { %v1963_v30 = vpop.f32.mrf.mxu3  ;;  %v1483_v41 = vpop.f32.mrf.mxu1 }
 0x198   : > { %v1991_v15 = vadd.f32 %v1963_v30, %v1657_v24  ;;  %v1508_v49 = vadd.f32 %v1483_v41, %v3705_v17 }
 0x19a   : > { %v2197_v33 = vadd.f32 %v2169_v59, %v1991_v15 }
 0x19b   : > { %v1631_v56 = vpop.f32.mrf.mxu2 }
 0x19c   : > { %v2244_v54 = vadd.f32 %v2243_v43, %v2197_v33  ;;  %v2267_v32 = vmul.f32 %v2197_v33, %v2197_v33  ;;  %v1658_v5 = vadd.f32 %v1631_v56, %v1507_v37 }
 0x19d   : > { %v2171_v18 = vpop.f32.mrf.mxu0 }
 0x19e   : > { %v2282_v52 = vadd.f32 %v2281_v16, %v2267_v32 }
 0x19f   : > { %v1965_v57 = vpop.f32.mrf.mxu3  ;;  %v1485_v47 = vpop.f32.mrf.mxu1 }
 0x1a0   : > { %v1992_v31 = vadd.f32 %v1965_v57, %v1658_v5  ;;  %v1509_v55 = vadd.f32 %v1485_v47, %v3719_v8 }
 0x1a2   : > { %v2198_v27 = vadd.f32 %v2171_v18, %v1992_v31 }
 0x1a3   : > { %v1634_v61 = vpop.f32.mrf.mxu2 }
 0x1a4   : > { %v2785_v42 = vpack.c.bf16 %v2198_v27, %v2197_v33  ;;  %v2245_v11 = vadd.f32 %v2244_v54, %v2198_v27  ;;  %v2268_v26 = vmul.f32 %v2198_v27, %v2198_v27  ;;  %v1659_v46 = vadd.f32 %v1634_v61, %v1508_v49 }
 0x1a5   : > { %v2174_v40 = vpop.f32.mrf.mxu0 }
 0x1a6   : > { %2805 = vst [vmem:[%s3756_s4 + $0x20] sm:$0xff] %v2785_v42   ;;  %v2283_v9 = vadd.f32 %v2282_v52, %v2268_v26 }
 0x1a7   : > { %v1968_v25 = vpop.f32.mrf.mxu3  ;;  %v1488_v51 = vpop.f32.mrf.mxu1 }
 0x1a8   : > { %v1993_v39 = vadd.f32 %v1968_v25, %v1659_v46  ;;  %v1510_v63 = vadd.f32 %v1488_v51, %v3731_v58 }
 0x1aa   : > { %v2199_v10 = vadd.f32 %v2174_v40, %v1993_v39 }
 0x1ab   : > { %v1636_v53 = vpop.f32.mrf.mxu2 }
 0x1ac   : > { %v2246_v45 = vadd.f32 %v2245_v11, %v2199_v10  ;;  %v2269_v62 = vmul.f32 %v2199_v10, %v2199_v10  ;;  %v1660_v0 = vadd.f32 %v1636_v53, %v1509_v55 }
 0x1ad   : > { %v2176_v17 = vpop.f32.mrf.mxu0 }
 0x1ae   : > { %v2284_v1 = vadd.f32 %v2283_v9, %v2269_v62 }
 0x1af   : > { %v1970_v7 = vpop.f32.mrf.mxu3  ;;  %v1490_v19 = vpop.f32.mrf.mxu1 }
 0x1b0   : > { %v1994_v3 = vadd.f32 %v1970_v7, %v1660_v0  ;;  %v1511_v36 = vadd.f32 %v1490_v19, %v3740_v28 }
 0x1b2   : > { %v2200_v21 = vadd.f32 %v2176_v17, %v1994_v3 }
 0x1b3   : > { %v1639_v6 = vpop.f32.mrf.mxu2 }
 0x1b4   : > { %v2790_v34 = vpack.c.bf16 %v2200_v21, %v2199_v10  ;;  %v2247_v35 = vadd.f32 %v2246_v45, %v2200_v21  ;;  %v2270_v20 = vmul.f32 %v2200_v21, %v2200_v21  ;;  %v1661_v14 = vadd.f32 %v1639_v6, %v1510_v63 }
 0x1b5   : > { %v2179_v13 = vpop.f32.mrf.mxu0 }
 0x1b6   : > { %2806 = vst [vmem:[%s3756_s4 + $0x28] sm:$0xff] %v2790_v34   ;;  %v2285_v8 = vadd.f32 %v2284_v1, %v2270_v20 }
 0x1b7   : > { %v1973_v12 = vpop.f32.mrf.mxu3  ;;  %v1493_v58 = vpop.f32.mrf.mxu1 }
 0x1b8   : > { %v1995_v60 = vadd.f32 %v1973_v12, %v1661_v14  ;;  %v1512_v16 = vadd.f32 %v1493_v58, %v3745_v29 }
 0x1ba   : > { %v2201_v22 = vadd.f32 %v2179_v13, %v1995_v60 }
 0x1bb   : > { %v1641_v2 = vpop.f32.mrf.mxu2 }
 0x1bc   : > { %v2248_v50 = vadd.f32 %v2247_v35, %v2201_v22  ;;  %v2271_v44 = vmul.f32 %v2201_v22, %v2201_v22  ;;  %v1662_v4 = vadd.f32 %v1641_v2, %v1511_v36 }
 0x1bd   : > { %v2181_v38 = vpop.f32.mrf.mxu0 }
 0x1be   : > { %v2286_v43 = vadd.f32 %v2285_v8, %v2271_v44 }
 0x1bf   : > { %v1975_v23 = vpop.f32.mrf.mxu3  ;;  %v1495_v56 = vpop.f32.mrf.mxu1 }
 0x1c0   : > { %v1996_v24 = vadd.f32 %v1975_v23, %v1662_v4  ;;  %v1513_v52 = vadd.f32 %v1495_v56, %v3747_v48 }
 0x1c2   : > { %v2202_v59 = vadd.f32 %v2181_v38, %v1996_v24 }
 0x1c3   : > { %v1644_v30 = vpop.f32.mrf.mxu2 }
 0x1c4   : > { %v2795_v41 = vpack.c.bf16 %v2202_v59, %v2201_v22  ;;  %v2249_v15 = vadd.f32 %v2248_v50, %v2202_v59  ;;  %v2272_v33 = vmul.f32 %v2202_v59, %v2202_v59  ;;  %v1663_v37 = vadd.f32 %v1644_v30, %v1512_v16 }
 0x1c5   : > { %v2184_v54 = vpop.f32.mrf.mxu0 }
 0x1c6   : > { %2807 = vst [vmem:[%s3756_s4 + $0x30] sm:$0xff] %v2795_v41   ;;  %v2287_v28 = vadd.f32 %v2286_v43, %v2272_v33 }
 0x1c7   : > { %v1978_v32 = vpop.f32.mrf.mxu3 }
 0x1c8   : > { %v1997_v5 = vadd.f32 %v1978_v32, %v1663_v37 }
 0x1ca   : > { %v2203_v18 = vadd.f32 %v2184_v54, %v1997_v5 }
 0x1cb   : > { %v1646_v57 = vpop.f32.mrf.mxu2 }
 0x1cc   : > { %v2250_v47 = vadd.f32 %v2249_v15, %v2203_v18  ;;  %v2273_v29 = vmul.f32 %v2203_v18, %v2203_v18  ;;  %v1664_v31 = vadd.f32 %v1646_v57, %v1513_v52 }
 0x1cd   : > { %v2186_v42 = vpop.f32.mrf.mxu0 }
 0x1ce   : > { %v2288_v27 = vadd.f32 %v2287_v28, %v2273_v29 }
 0x1cf   : > { %v1980_v49 = vpop.f32.mrf.mxu3 }
 0x1d0   : > { %v1998_v61 = vadd.f32 %v1980_v49, %v1664_v31 }
 0x1d2   : > { %v2204_v11 = vadd.f32 %v2186_v42, %v1998_v61 }
 0x1d4   : > { %v2800_v48 = vpack.c.bf16 %v2204_v11, %v2203_v18  ;;  %v2251_v26 = vadd.f32 %v2250_v47, %v2204_v11  ;;  %v2274_v46 = vmul.f32 %v2204_v11, %v2204_v11 }
 0x1d6   : > { %2808 = vst [vmem:[%s3756_s4 + $0x38] sm:$0xff] %v2800_v48   ;;  %v2252_v40 = vrot.slane %v2251_v26, 4  ;;  %v2289_v9 = vadd.f32 %v2288_v27, %v2274_v46 }
 0x1d7   : > { %2886 = shalt.err (!%p2883_p3)
}
 0x1d8   : > { %s2955_s28 = smov 64   ;;  %s2956_s30 = smov 4   ;;  %v2253_v25 = vadd.f32 %v2252_v40, %v2251_v26  ;;  %v2290_v39 = vrot.slane %v2289_v9, 4 }
 0x1d9   : > { %2813 = dma.vmem_to_hbm [thread:$0]  (%p3015_p5), %s2316_s9, 1024, %s2318_s10, %s2298_s11, %s2955_s28, %s2955_s28, %s2956_s30  }
 0x1da   : > { %s2432_s4 = sshll.u32 %s3752_s29, 1  ;;  %s2734_s5 = sshll.u32 %s2998_s16, 1  ;;  %v2254_v51 = vrot.slane %v2253_v25, 2  ;;  %v2291_v10 = vadd.f32 %v2290_v39, %v2289_v9 }
 0x1db   : > { %s2330_s8 = scalar_lea.hbm %s3831_s3, %s2734_s5  ;;  %s174_s17 = scalar_lea.vmem [#allocation4], %s2432_s4 }
 0x1dc   : > { %v2255_v55 = vadd.f32 %v2254_v51, %v2253_v25  ;;  %v2292_v53 = vrot.slane %v2291_v10, 2  ;;  %s2332_s19 = sshll.u32 %s174_s17, 4  ;;  %s2334_s20 = sshll.u32 %s2330_s8, 4  ;;  %s2333_s19 = int_to_ptr.vmem [resolvable:$true] %s2332_s19  ;;  %s2335_s20 = int_to_ptr.hbm [resolvable:$true] %s2334_s20 }
 0x1dd   : > { %s2303_s16 = scalar_lea.sflag [#allocation5], %s3752_s29  ;;  %s2901_s9 = sshra.s32 %s2335_s20, 4  ;;  %s2902_s9 = int_to_ptr.hbm [resolvable:$true] %s2901_s9 }
 0x1de   : > { %v2256_v45 = vrot.slane %v2255_v55, 1  ;;  %v2293_v62 = vadd.f32 %v2292_v53, %v2291_v10  ;;  %s2903_s10 = scalar_lea.hbm %s2902_s9, 2  ;;  %s2907_s25 = scalar_lea.hbm %s3831_s3, 8 }
 0x1df   : > { %p2904_p4 = scmp.ne.s32.totalorder %s2902_s9, %s2903_s10  ;;  %p2908_p9 = scmp.lt.s32.totalorder %s2902_s9, %s3831_s3 }
 0x1e0   : > { %v2257_v0 = vadd.f32 %v2256_v45, %v2255_v55  ;;  %v2294_v17 = vrot.slane %v2293_v62, 1  ;;  %p2909_p10 = scmp.lt.s32.totalorder %s2907_s25, %s2903_s10 }
 0x1e1   : > { %p2905_p7 = pnand %p2904_p4, %p3015_p5 }
 0x1e2   : > { %2258 = vst [vmem:[%s174_s17] sm:$0x1] %v2257_v0  ;;  %v2295_v1 = vadd.f32 %v2294_v17, %v2293_v62  ;;  %p2910_p11 = por %p2909_p10, %p2908_p9 }
 0x1e3   : > { %p2906_p8 = pneg %p2905_p7 }
 0x1e4   : > { %2296 = vst [vmem:[%s174_s17 + $0x1] sm:$0x1] %v2295_v1 }
 0x1e5   : > { %p2911_p12 = pnand %p2910_p11, %p2906_p8 }
 0x1e7   : > { %2914 = shalt.err (!%p2911_p12)
}
 0x1e8   : > { %2814 = dma.vmem_to_hbm [thread:$0]  (%p3015_p5), %s2333_s19, 32, %s2335_s20, %s2303_s16  }
 0x1e9 PF: > { %p2824_p13 = scmp.ge.s32.totalorder %s2953_s15, 2  ;;  %s2346_s29 = sand.u32 1, %s2941_s12  }
 0x1ea   : > { %s2347_s28 = scalar_lea.sflag [#allocation3], %s2346_s29 }
 0x1eb   : > { %p2818_p0 = pnand %p2824_p13, %p3019_p6 }
 0x1ed   : > { %p2819_p1 = pneg %p2818_p0 }
 0x1ef   : > { %2932 = dma.done.wait (%p2819_p1), %s2347_s28, 1024  }
 0x1f0   : > { %2934 = vsyncadd (%p2819_p1), %s2347_s28, 4294966272  ;;  %s2357_s30 = scalar_lea.sflag [#allocation5], %s2346_s29 }
 0x1f1   : > { %2936 = dma.done.wait (%p2819_p1), %s2357_s30, 32  }
 0x1f2   : > { %2938 = vsyncadd (%p2819_p1), %s2357_s30, 4294967264  ;;  %p17_p5 = scmp.ge.s32.totalorder %s3002_s18, 6   ;;  %s3838_s12 = smov %s2945_s13 }
 0x1f3   : > { %s3839_s13 = smov %s2949_s14  ;;  %s3840_s14 = smov %s3013_s21 }
 0x1f4   : > { %s3841_s15 = smov %s3002_s18  ;;  %19 = sbr.rel (!%p17_p5) target bundleno = 5 (0x5), region = 90 }
 0x1f9   :  { %2363 = vsyncpa [#allocation3], 1 }
 0x1fa   :  { %2365 = vsyncpa [#allocation3 + $0x1], 1 }
 0x1fb   :  { %2366 = vsyncpa [#allocation5], 1 }
 0x1fc   :  { %2368 = vsyncpa [#allocation5 + $0x1], 1 }

</bundles_post_ra>
